<compile_context>
chip_gen: v5e
topology: v5e:2x2
jax: 0.10.0
libtpu: 0.0.40
codegen_flags: <defaults>
</compile_context>

<pallas_src>
import jax
import jax.numpy as jnp
from jax import lax
from jax.experimental import pallas as pl
from jax.experimental.pallas import tpu as pltpu

HIDDEN_DIM = 80   # module default
NUM_HEADS = 8     # module default -> dh = 10

_MASK_VAL = -1e30   # sentinel score for non-edges
_M_FLOOR = -1e29    # running-max floor; any real score is assumed > _M_FLOOR


def _pick_tile(n, candidates=(128,)):
    for c in candidates:
        if n >= c and n % c == 0:
            return c
    return n   # fallback: whole axis (block == full dim is always legal)


# ------------------------------------------------ q/k projection kernel -----
def _qk_proj_kernel(x_ref, w_ref, b_ref, o_ref):
    # x:(tn, D)  w:(2nh, dh, D)  b:(2nh, dh, 1)  o:(2nh, dh, tn)  (lane = node)
    xt = x_ref[...].T                                     # (D, tn), lane-dense

    def body(e, carry):
        o_ref[e] = (jnp.dot(w_ref[e], xt, preferred_element_type=jnp.float32)
                    + b_ref[e])
        return carry

    lax.fori_loop(0, o_ref.shape[0], body, 0, unroll=True)


def qk_projection(h, w_qk, b_qk, *, tn=None):
    """qk[e, d, n] = (W_e @ h[n] + b_e)[d]; e in [0,nh) are q heads, [nh,2nh) k."""
    N, D = h.shape
    two_nh, dh, _ = w_qk.shape
    tn = _pick_tile(N, (512, 256, 128)) if tn is None else tn
    if N % tn:
        raise ValueError(f"tile tn={tn} must divide N={N}")
    return pl.pallas_call(
        _qk_proj_kernel,
        out_shape=jax.ShapeDtypeStruct((two_nh, dh, N), jnp.float32),
        grid=(N // tn,),
        in_specs=[
            pl.BlockSpec((tn, D), lambda i: (i, 0)),
            pl.BlockSpec((two_nh, dh, D), lambda i: (0, 0, 0)),
            pl.BlockSpec((two_nh, dh, 1), lambda i: (0, 0, 0)),
        ],
        out_specs=pl.BlockSpec((two_nh, dh, tn), lambda i: (0, 0, i)),
        compiler_params=pltpu.CompilerParams(
            dimension_semantics=("parallel",)),
    )(h, w_qk, b_qk)


# --------------------------- flash-style sparse attention (+ fused out) -----
def _flash_sparse_attn_kernel(flags_ref, a_ref, q_ref, k_ref, wo_ref, bo_ref,
                              o_ref, m_ref, l_ref, acc_ref):
    nh, dh, _ = acc_ref.shape
    tk = a_ref.shape[1]
    ki = pl.program_id(1)
    nk = pl.num_programs(1)

    @pl.when(ki == 0)
    def _init():
        m_ref[...] = jnp.full_like(m_ref, _M_FLOOR)
        l_ref[...] = jnp.zeros_like(l_ref)
        acc_ref[...] = jnp.zeros_like(acc_ref)

    # Skip all compute for adjacency tiles with no edges (block-sparse skip).
    @pl.when(flags_ref[pl.program_id(0) * nk + ki] > 0)
    def _compute():
        # Scores live in (tk, tq) orientation: queries on lanes everywhere.
        a_t = a_ref[...].T                                 # (tk, tq)
        bias = jnp.where(a_t != 0.0, 0.0, _MASK_VAL)       # (tk, tq) additive mask
        ones_row = jnp.ones((1, tk), jnp.bfloat16)

        def head_body(hh, carry):
            qh = q_ref[hh].astype(jnp.bfloat16)            # (dh, tq)
            kh = k_ref[hh].astype(jnp.bfloat16)            # (dh, tk)  (also V)
            # raw[j, i] = sum_d k[d, j] q[d, i]
            raw = lax.dot_general(kh, qh, (((0,), (0,)), ((), ())),
                                  preferred_element_type=jnp.float32)  # (tk, tq)
            s = a_t * raw + bias                           # masked -> -1e30

            m_prev = m_ref[hh]                             # (1, tq)
            m_new = jnp.maximum(m_prev, jnp.max(s, axis=0, keepdims=True))
            p = jnp.exp(s - m_new)                         # (tk, tq); masked -> 0
            alpha = jnp.exp(m_prev - m_new)                # (1, tq)
            p_b = p.astype(jnp.bfloat16)

            # p @ V and the softmax denominator both on the (idle) MXU.
            pv = lax.dot_general(kh, p_b, (((1,), (0,)), ((), ())),
                                 preferred_element_type=jnp.float32)   # (dh, tq)
            ps = lax.dot_general(ones_row, p_b, (((1,), (0,)), ((), ())),
                                 preferred_element_type=jnp.float32)   # (1, tq)

            acc_ref[hh] = alpha * acc_ref[hh] + pv
            l_ref[hh] = alpha * l_ref[hh] + ps
            m_ref[hh] = m_new
            return carry

        lax.fori_loop(0, nh, head_body, 0, unroll=True)

    # Finalize: normalize + fused output projection, written lane-dense (D, tq).
    @pl.when(ki == nk - 1)
    def _finalize():
        def proj_body(hh, out):
            l = l_ref[hh]                                  # (1, tq)
            inv = pl.reciprocal(jnp.where(l == 0.0, 1.0, l), approx=True)
            outh = acc_ref[hh] * inv                       # (dh, tq)
            return out + jnp.dot(wo_ref[hh], outh,
                                 preferred_element_type=jnp.float32)   # (D, tq)

        out = lax.fori_loop(0, nh, proj_body,
                            jnp.zeros(o_ref.shape, jnp.float32), unroll=True)
        o_ref[...] = (out + bo_ref[...]).astype(o_ref.dtype)


def sparse_attention(tile_flags, A, qk, wo3, bo_col, *, tq, tk):
    """Returns result^T of shape (D, N):
       result = out_proj( concat_h softmax_sparse(A * q_h k_h^T) @ k_h )."""
    two_nh, dh, N = qk.shape
    nh = two_nh // 2
    D = wo3.shape[1]
    if N % tq or N % tk:
        raise ValueError(f"tiles tq={tq}, tk={tk} must divide N={N}")
    nq, nk = N // tq, N // tk

    grid_spec = pltpu.PrefetchScalarGridSpec(
        num_scalar_prefetch=1,                  # per-tile occupancy flags (SMEM)
        grid=(nq, nk),
        in_specs=[
            pl.BlockSpec((tq, tk), lambda qi, ki, flags: (qi, ki)),        # A
            pl.BlockSpec((nh, dh, tq), lambda qi, ki, flags: (0, 0, qi)),  # q heads
            pl.BlockSpec((nh, dh, tk), lambda qi, ki, flags: (1, 0, ki)),  # k heads
            pl.BlockSpec((nh, D, dh), lambda qi, ki, flags: (0, 0, 0)),    # wo3
            pl.BlockSpec((D, 1), lambda qi, ki, flags: (0, 0)),            # bo
        ],
        out_specs=pl.BlockSpec((D, tq), lambda qi, ki, flags: (0, qi)),
        scratch_shapes=[
            pltpu.VMEM((nh, 1, tq), jnp.float32),    # running max m
            pltpu.VMEM((nh, 1, tq), jnp.float32),    # running denom l
            pltpu.VMEM((nh, dh, tq), jnp.float32),   # running numerator
        ],
    )
    return pl.pallas_call(
        _flash_sparse_attn_kernel,
        out_shape=jax.ShapeDtypeStruct((D, N), jnp.float32),
        grid_spec=grid_spec,
        compiler_params=pltpu.CompilerParams(
            dimension_semantics=("parallel", "arbitrary")),
    )(tile_flags, A, qk, qk, wo3, bo_col)      # qk passed twice (q rows / k rows)


# --------------------------------------------------- static weight prep -----
def prepare_params(params, num_heads=NUM_HEADS):
    """Fold per-forward layout work into static weights:
       PyTorch's reshape(N, dh, nh) head interleave -> weight permutation,
       per-head (dh, D) projection slabs, per-head (D, dh) output-proj slabs."""
    D = params["wq"].shape[0]
    dh = D // num_heads
    # new head-major index hh*dh + d  <-  old (PyTorch) index d*nh + hh
    perm = jnp.arange(D).reshape(dh, num_heads).T.reshape(-1)

    wq3 = params["wq"][perm, :].reshape(num_heads, dh, D)
    wk3 = params["wk"][perm, :].reshape(num_heads, dh, D)
    bq3 = params["bq"][perm].reshape(num_heads, dh, 1)
    bk3 = params["bk"][perm].reshape(num_heads, dh, 1)

    wo3 = params["wo"][:, perm].reshape(D, num_heads, dh).transpose(1, 0, 2)

    return {
        "num_heads": num_heads,
        "w_qk": jnp.concatenate([wq3, wk3], axis=0),   # (2nh, dh, D)
        "b_qk": jnp.concatenate([bq3, bk3], axis=0),   # (2nh, dh, 1)
        "wo3": wo3,                                    # (nh, D, dh)
        "bo_col": params["bo"][:, None],               # (D, 1)
    }


# --------------------------------------------------------------- forward ----
def sparse_mha_forward(prep, A, h, *, tq=None, tk=None, tn=None):
    N, D = h.shape
    tq = _pick_tile(N) if tq is None else tq
    tk = _pick_tile(N) if tk is None else tk
    if N % tq or N % tk:
        raise ValueError(f"tiles tq={tq}, tk={tk} must divide N={N}")

    qk = qk_projection(h, prep["w_qk"], prep["b_qk"], tn=tn)   # (2nh, dh, N)

    # Per-tile occupancy flags for block-sparse compute skipping.  In a real
    # graph setting this comes precomputed from the graph structure.
    nq, nk = N // tq, N // tk
    tile_flags = ((A.reshape(nq, tq, nk, tk) != 0.0)
                  .any(axis=(1, 3)).astype(jnp.int32).reshape(-1))

    out_t = sparse_attention(tile_flags, A, qk, prep["wo3"], prep["bo_col"],
                             tq=tq, tk=tk)                     # (D, N), fused out_proj
    return out_t.T                                             # (N, D)


# ------------------------------------------------------ pure-JAX reference --
def reference_forward(params, A, h):
    N, D = h.shape
    nh = NUM_HEADS
    dh = D // nh
    hp = lax.Precision.HIGHEST
    q = (jnp.dot(h, params["wq"].T, precision=hp) + params["bq"]).reshape(N, dh, nh)
    k = (jnp.dot(h, params["wk"].T, precision=hp) + params["bk"]).reshape(N, dh, nh)
    v = k  # the module uses linear_k for v (linear_v is unused in forward)
    raw = jnp.einsum("idh,jdh->ijh", q, k, precision=hp)
    scores = A[:, :, None] * raw
    mask = (A != 0.0)[:, :, None]
    masked = jnp.where(mask, scores, -1e30)
    m = jnp.max(masked, axis=1, keepdims=True)
    p = jnp.where(mask, jnp.exp(masked - m), 0.0)
    denom = jnp.sum(p, axis=1, keepdims=True)
    attn = p / jnp.where(denom > 0, denom, 1.0)
    out = jnp.einsum("ijh,jdh->idh", attn, v, precision=hp).reshape(N, D)
    return jnp.dot(out, params["wo"].T, precision=hp) + params["bo"]


# ------------------------------------------------------------------- main ---
def init_params(key, hidden_dim):
    ks = jax.random.split(key, 8)
    bound = 1.0 / jnp.sqrt(hidden_dim)
    u = lambda k, shp: jax.random.uniform(k, shp, jnp.float32, -bound, bound)
    return {
        "wq": u(ks[0], (hidden_dim, hidden_dim)), "bq": u(ks[1], (hidden_dim,)),
        "wk": u(ks[2], (hidden_dim, hidden_dim)), "bk": u(ks[3], (hidden_dim,)),
        # linear_v exists in the module but is never used in forward:
        "wv": u(ks[4], (hidden_dim, hidden_dim)), "bv": u(ks[5], (hidden_dim,)),
        "wo": u(ks[6], (hidden_dim, hidden_dim)), "bo": u(ks[7], (hidden_dim,)),
    }


if __name__ == "__main__":
    N = 256            # small graph; 128-tiles exercise the (2, 2) flash grid
    D = HIDDEN_DIM

    key = jax.random.PRNGKey(0)
    k_param, k_h, k_a = jax.random.split(key, 3)

    params = init_params(k_param, D)
    prep = prepare_params(params, NUM_HEADS)
    h = jax.random.normal(k_h, (N, D), jnp.float32)

    # Random sparse adjacency (values = 1.0); self-loops guarantee each row
    # has at least one nonzero, as in a typical dgl graph.
    edge_mask = jax.random.bernoulli(k_a, 0.3, (N, N))
    A = jnp.where(edge_mask | jnp.eye(N, dtype=bool), 1.0, 0.0).astype(jnp.float32)

    out = sparse_mha_forward(prep, A, h, tq=128, tk=128)
    out = jax.block_until_ready(out)

    ref = reference_forward(params, A, h)
    assert out.shape == (N, D)
    max_err = jnp.max(jnp.abs(out - ref))
    assert jnp.allclose(out, ref, atol=1e-2, rtol=1e-2), (
        f"mismatch vs reference (max abs err {max_err})")

    print("KERNEL_OK")
</pallas_src>

<mosaic_0001>
module attributes {stable_mosaic.version = 11 : i64} {
  func.func @_qk_proj_kernel(%arg0: i32, %arg1: memref<256x80xf32, #tpu.memory_space<vmem>>, %arg2: memref<16x10x80xf32, #tpu.memory_space<vmem>>, %arg3: memref<16x10x1xf32, #tpu.memory_space<vmem>>, %arg4: memref<16x10x256xf32, #tpu.memory_space<vmem>>) attributes {dimension_semantics = [#tpu.dimension_semantics<parallel>], iteration_bounds = array<i64: 1>, scalar_prefetch = 0 : i64, scratch_operands = 0 : i64, tpu.core_type = #tpu.core_type<tc>, window_params = [{transform_indices = @transform_0, window_bounds = array<i64: 256, 80>}, {pipeline_mode = #tpu.pipeline_mode<synchronous>, transform_indices = @transform_1, window_bounds = array<i64: 16, 10, 80>}, {pipeline_mode = #tpu.pipeline_mode<synchronous>, transform_indices = @transform_2, window_bounds = array<i64: 16, 10, 1>}, {transform_indices = @transform_3, window_bounds = array<i64: 16, 10, 256>}]} {
    %c0 = arith.constant 0 : index
    %c0_0 = arith.constant 0 : index
    %0 = vector.load %arg1[%c0, %c0_0] : memref<256x80xf32, #tpu.memory_space<vmem>>, vector<256x80xf32>
    %1 = tpu.transpose %0, [1, 0] : vector<256x80xf32> -> vector<80x256xf32>
    %c0_i32 = arith.constant 0 : i32
    %2 = arith.index_cast %c0_i32 : i32 to index
    %c0_1 = arith.constant 0 : index
    %c0_2 = arith.constant 0 : index
    %3 = vector.load %arg2[%2, %c0_1, %c0_2] : memref<16x10x80xf32, #tpu.memory_space<vmem>>, vector<1x10x80xf32>
    %4 = vector.shape_cast %3 : vector<1x10x80xf32> to vector<10x80xf32>
    %cst = arith.constant dense<0.000000e+00> : vector<10x256xf32>
    %5 = tpu.matmul %4, %1, %cst {dimension_numbers = #tpu.dot_dimension_numbers<[1], [0], [0], [1], [0, 0, 1, 1], [], []>} : vector<10x80xf32>, vector<80x256xf32>, vector<10x256xf32> -> vector<10x256xf32>
    %6 = arith.index_cast %c0_i32 : i32 to index
    %c0_3 = arith.constant 0 : index
    %c0_4 = arith.constant 0 : index
    %7 = vector.load %arg3[%6, %c0_3, %c0_4] : memref<16x10x1xf32, #tpu.memory_space<vmem>>, vector<1x10x1xf32>
    %8 = vector.shape_cast %7 : vector<1x10x1xf32> to vector<10x1xf32>
    %9 = vector.broadcast %8 : vector<10x1xf32> to vector<10x256xf32>
    %10 = arith.addf %5, %9 : vector<10x256xf32>
    %11 = arith.index_cast %c0_i32 : i32 to index
    %c0_5 = arith.constant 0 : index
    %c0_6 = arith.constant 0 : index
    %12 = vector.load %arg4[%11, %c0_5, %c0_6] : memref<16x10x256xf32, #tpu.memory_space<vmem>>, vector<1x10x256xf32>
    %13 = vector.shape_cast %12 : vector<1x10x256xf32> to vector<10x256xf32>
    %14 = vector.shape_cast %10 : vector<10x256xf32> to vector<1x10x256xf32>
    tpu.vector_store %arg4[%11, %c0_5, %c0_6], %14 {strides = array<i32>} : memref<16x10x256xf32, #tpu.memory_space<vmem>>, vector<1x10x256xf32>,
    %c1_i32 = arith.constant 1 : i32
    %15 = arith.index_cast %c1_i32 : i32 to index
    %c0_7 = arith.constant 0 : index
    %c0_8 = arith.constant 0 : index
    %16 = vector.load %arg2[%15, %c0_7, %c0_8] : memref<16x10x80xf32, #tpu.memory_space<vmem>>, vector<1x10x80xf32>
    %17 = vector.shape_cast %16 : vector<1x10x80xf32> to vector<10x80xf32>
    %cst_9 = arith.constant dense<0.000000e+00> : vector<10x256xf32>
    %18 = tpu.matmul %17, %1, %cst_9 {dimension_numbers = #tpu.dot_dimension_numbers<[1], [0], [0], [1], [0, 0, 1, 1], [], []>} : vector<10x80xf32>, vector<80x256xf32>, vector<10x256xf32> -> vector<10x256xf32>
    %19 = arith.index_cast %c1_i32 : i32 to index
    %c0_10 = arith.constant 0 : index
    %c0_11 = arith.constant 0 : index
    %20 = vector.load %arg3[%19, %c0_10, %c0_11] : memref<16x10x1xf32, #tpu.memory_space<vmem>>, vector<1x10x1xf32>
    %21 = vector.shape_cast %20 : vector<1x10x1xf32> to vector<10x1xf32>
    %22 = vector.broadcast %21 : vector<10x1xf32> to vector<10x256xf32>
    %23 = arith.addf %18, %22 : vector<10x256xf32>
    %24 = arith.index_cast %c1_i32 : i32 to index
    %c0_12 = arith.constant 0 : index
    %c0_13 = arith.constant 0 : index
    %25 = vector.load %arg4[%24, %c0_12, %c0_13] : memref<16x10x256xf32, #tpu.memory_space<vmem>>, vector<1x10x256xf32>
    %26 = vector.shape_cast %25 : vector<1x10x256xf32> to vector<10x256xf32>
    %27 = vector.shape_cast %23 : vector<10x256xf32> to vector<1x10x256xf32>
    tpu.vector_store %arg4[%24, %c0_12, %c0_13], %27 {strides = array<i32>} : memref<16x10x256xf32, #tpu.memory_space<vmem>>, vector<1x10x256xf32>,
    %c2_i32 = arith.constant 2 : i32
    %28 = arith.index_cast %c2_i32 : i32 to index
    %c0_14 = arith.constant 0 : index
    %c0_15 = arith.constant 0 : index
    %29 = vector.load %arg2[%28, %c0_14, %c0_15] : memref<16x10x80xf32, #tpu.memory_space<vmem>>, vector<1x10x80xf32>
    %30 = vector.shape_cast %29 : vector<1x10x80xf32> to vector<10x80xf32>
    %cst_16 = arith.constant dense<0.000000e+00> : vector<10x256xf32>
    %31 = tpu.matmul %30, %1, %cst_16 {dimension_numbers = #tpu.dot_dimension_numbers<[1], [0], [0], [1], [0, 0, 1, 1], [], []>} : vector<10x80xf32>, vector<80x256xf32>, vector<10x256xf32> -> vector<10x256xf32>
    %32 = arith.index_cast %c2_i32 : i32 to index
    %c0_17 = arith.constant 0 : index
    %c0_18 = arith.constant 0 : index
    %33 = vector.load %arg3[%32, %c0_17, %c0_18] : memref<16x10x1xf32, #tpu.memory_space<vmem>>, vector<1x10x1xf32>
    %34 = vector.shape_cast %33 : vector<1x10x1xf32> to vector<10x1xf32>
    %35 = vector.broadcast %34 : vector<10x1xf32> to vector<10x256xf32>
    %36 = arith.addf %31, %35 : vector<10x256xf32>
    %37 = arith.index_cast %c2_i32 : i32 to index
    %c0_19 = arith.constant 0 : index
    %c0_20 = arith.constant 0 : index
    %38 = vector.load %arg4[%37, %c0_19, %c0_20] : memref<16x10x256xf32, #tpu.memory_space<vmem>>, vector<1x10x256xf32>
    %39 = vector.shape_cast %38 : vector<1x10x256xf32> to vector<10x256xf32>
    %40 = vector.shape_cast %36 : vector<10x256xf32> to vector<1x10x256xf32>
    tpu.vector_store %arg4[%37, %c0_19, %c0_20], %40 {strides = array<i32>} : memref<16x10x256xf32, #tpu.memory_space<vmem>>, vector<1x10x256xf32>,
    %c3_i32 = arith.constant 3 : i32
    %41 = arith.index_cast %c3_i32 : i32 to index
    %c0_21 = arith.constant 0 : index
    %c0_22 = arith.constant 0 : index
    %42 = vector.load %arg2[%41, %c0_21, %c0_22] : memref<16x10x80xf32, #tpu.memory_space<vmem>>, vector<1x10x80xf32>
    %43 = vector.shape_cast %42 : vector<1x10x80xf32> to vector<10x80xf32>
    %cst_23 = arith.constant dense<0.000000e+00> : vector<10x256xf32>
    %44 = tpu.matmul %43, %1, %cst_23 {dimension_numbers = #tpu.dot_dimension_numbers<[1], [0], [0], [1], [0, 0, 1, 1], [], []>} : vector<10x80xf32>, vector<80x256xf32>, vector<10x256xf32> -> vector<10x256xf32>
    %45 = arith.index_cast %c3_i32 : i32 to index
    %c0_24 = arith.constant 0 : index
    %c0_25 = arith.constant 0 : index
    %46 = vector.load %arg3[%45, %c0_24, %c0_25] : memref<16x10x1xf32, #tpu.memory_space<vmem>>, vector<1x10x1xf32>
    %47 = vector.shape_cast %46 : vector<1x10x1xf32> to vector<10x1xf32>
    %48 = vector.broadcast %47 : vector<10x1xf32> to vector<10x256xf32>
    %49 = arith.addf %44, %48 : vector<10x256xf32>
    %50 = arith.index_cast %c3_i32 : i32 to index
    %c0_26 = arith.constant 0 : index
    %c0_27 = arith.constant 0 : index
    %51 = vector.load %arg4[%50, %c0_26, %c0_27] : memref<16x10x256xf32, #tpu.memory_space<vmem>>, vector<1x10x256xf32>
    %52 = vector.shape_cast %51 : vector<1x10x256xf32> to vector<10x256xf32>
    %53 = vector.shape_cast %49 : vector<10x256xf32> to vector<1x10x256xf32>
    tpu.vector_store %arg4[%50, %c0_26, %c0_27], %53 {strides = array<i32>} : memref<16x10x256xf32, #tpu.memory_space<vmem>>, vector<1x10x256xf32>,
    %c4_i32 = arith.constant 4 : i32
    %54 = arith.index_cast %c4_i32 : i32 to index
    %c0_28 = arith.constant 0 : index
    %c0_29 = arith.constant 0 : index
    %55 = vector.load %arg2[%54, %c0_28, %c0_29] : memref<16x10x80xf32, #tpu.memory_space<vmem>>, vector<1x10x80xf32>
    %56 = vector.shape_cast %55 : vector<1x10x80xf32> to vector<10x80xf32>
    %cst_30 = arith.constant dense<0.000000e+00> : vector<10x256xf32>
    %57 = tpu.matmul %56, %1, %cst_30 {dimension_numbers = #tpu.dot_dimension_numbers<[1], [0], [0], [1], [0, 0, 1, 1], [], []>} : vector<10x80xf32>, vector<80x256xf32>, vector<10x256xf32> -> vector<10x256xf32>
    %58 = arith.index_cast %c4_i32 : i32 to index
    %c0_31 = arith.constant 0 : index
    %c0_32 = arith.constant 0 : index
    %59 = vector.load %arg3[%58, %c0_31, %c0_32] : memref<16x10x1xf32, #tpu.memory_space<vmem>>, vector<1x10x1xf32>
    %60 = vector.shape_cast %59 : vector<1x10x1xf32> to vector<10x1xf32>
    %61 = vector.broadcast %60 : vector<10x1xf32> to vector<10x256xf32>
    %62 = arith.addf %57, %61 : vector<10x256xf32>
    %63 = arith.index_cast %c4_i32 : i32 to index
    %c0_33 = arith.constant 0 : index
    %c0_34 = arith.constant 0 : index
    %64 = vector.load %arg4[%63, %c0_33, %c0_34] : memref<16x10x256xf32, #tpu.memory_space<vmem>>, vector<1x10x256xf32>
    %65 = vector.shape_cast %64 : vector<1x10x256xf32> to vector<10x256xf32>
    %66 = vector.shape_cast %62 : vector<10x256xf32> to vector<1x10x256xf32>
    tpu.vector_store %arg4[%63, %c0_33, %c0_34], %66 {strides = array<i32>} : memref<16x10x256xf32, #tpu.memory_space<vmem>>, vector<1x10x256xf32>,
    %c5_i32 = arith.constant 5 : i32
    %67 = arith.index_cast %c5_i32 : i32 to index
    %c0_35 = arith.constant 0 : index
    %c0_36 = arith.constant 0 : index
    %68 = vector.load %arg2[%67, %c0_35, %c0_36] : memref<16x10x80xf32, #tpu.memory_space<vmem>>, vector<1x10x80xf32>
    %69 = vector.shape_cast %68 : vector<1x10x80xf32> to vector<10x80xf32>
    %cst_37 = arith.constant dense<0.000000e+00> : vector<10x256xf32>
    %70 = tpu.matmul %69, %1, %cst_37 {dimension_numbers = #tpu.dot_dimension_numbers<[1], [0], [0], [1], [0, 0, 1, 1], [], []>} : vector<10x80xf32>, vector<80x256xf32>, vector<10x256xf32> -> vector<10x256xf32>
    %71 = arith.index_cast %c5_i32 : i32 to index
    %c0_38 = arith.constant 0 : index
    %c0_39 = arith.constant 0 : index
    %72 = vector.load %arg3[%71, %c0_38, %c0_39] : memref<16x10x1xf32, #tpu.memory_space<vmem>>, vector<1x10x1xf32>
    %73 = vector.shape_cast %72 : vector<1x10x1xf32> to vector<10x1xf32>
    %74 = vector.broadcast %73 : vector<10x1xf32> to vector<10x256xf32>
    %75 = arith.addf %70, %74 : vector<10x256xf32>
    %76 = arith.index_cast %c5_i32 : i32 to index
    %c0_40 = arith.constant 0 : index
    %c0_41 = arith.constant 0 : index
    %77 = vector.load %arg4[%76, %c0_40, %c0_41] : memref<16x10x256xf32, #tpu.memory_space<vmem>>, vector<1x10x256xf32>
    %78 = vector.shape_cast %77 : vector<1x10x256xf32> to vector<10x256xf32>
    %79 = vector.shape_cast %75 : vector<10x256xf32> to vector<1x10x256xf32>
    tpu.vector_store %arg4[%76, %c0_40, %c0_41], %79 {strides = array<i32>} : memref<16x10x256xf32, #tpu.memory_space<vmem>>, vector<1x10x256xf32>,
    %c6_i32 = arith.constant 6 : i32
    %80 = arith.index_cast %c6_i32 : i32 to index
    %c0_42 = arith.constant 0 : index
    %c0_43 = arith.constant 0 : index
    %81 = vector.load %arg2[%80, %c0_42, %c0_43] : memref<16x10x80xf32, #tpu.memory_space<vmem>>, vector<1x10x80xf32>
    %82 = vector.shape_cast %81 : vector<1x10x80xf32> to vector<10x80xf32>
    %cst_44 = arith.constant dense<0.000000e+00> : vector<10x256xf32>
    %83 = tpu.matmul %82, %1, %cst_44 {dimension_numbers = #tpu.dot_dimension_numbers<[1], [0], [0], [1], [0, 0, 1, 1], [], []>} : vector<10x80xf32>, vector<80x256xf32>, vector<10x256xf32> -> vector<10x256xf32>
    %84 = arith.index_cast %c6_i32 : i32 to index
    %c0_45 = arith.constant 0 : index
    %c0_46 = arith.constant 0 : index
    %85 = vector.load %arg3[%84, %c0_45, %c0_46] : memref<16x10x1xf32, #tpu.memory_space<vmem>>, vector<1x10x1xf32>
    %86 = vector.shape_cast %85 : vector<1x10x1xf32> to vector<10x1xf32>
    %87 = vector.broadcast %86 : vector<10x1xf32> to vector<10x256xf32>
    %88 = arith.addf %83, %87 : vector<10x256xf32>
    %89 = arith.index_cast %c6_i32 : i32 to index
    %c0_47 = arith.constant 0 : index
    %c0_48 = arith.constant 0 : index
    %90 = vector.load %arg4[%89, %c0_47, %c0_48] : memref<16x10x256xf32, #tpu.memory_space<vmem>>, vector<1x10x256xf32>
    %91 = vector.shape_cast %90 : vector<1x10x256xf32> to vector<10x256xf32>
    %92 = vector.shape_cast %88 : vector<10x256xf32> to vector<1x10x256xf32>
    tpu.vector_store %arg4[%89, %c0_47, %c0_48], %92 {strides = array<i32>} : memref<16x10x256xf32, #tpu.memory_space<vmem>>, vector<1x10x256xf32>,
    %c7_i32 = arith.constant 7 : i32
    %93 = arith.index_cast %c7_i32 : i32 to index
    %c0_49 = arith.constant 0 : index
    %c0_50 = arith.constant 0 : index
    %94 = vector.load %arg2[%93, %c0_49, %c0_50] : memref<16x10x80xf32, #tpu.memory_space<vmem>>, vector<1x10x80xf32>
    %95 = vector.shape_cast %94 : vector<1x10x80xf32> to vector<10x80xf32>
    %cst_51 = arith.constant dense<0.000000e+00> : vector<10x256xf32>
    %96 = tpu.matmul %95, %1, %cst_51 {dimension_numbers = #tpu.dot_dimension_numbers<[1], [0], [0], [1], [0, 0, 1, 1], [], []>} : vector<10x80xf32>, vector<80x256xf32>, vector<10x256xf32> -> vector<10x256xf32>
    %97 = arith.index_cast %c7_i32 : i32 to index
    %c0_52 = arith.constant 0 : index
    %c0_53 = arith.constant 0 : index
    %98 = vector.load %arg3[%97, %c0_52, %c0_53] : memref<16x10x1xf32, #tpu.memory_space<vmem>>, vector<1x10x1xf32>
    %99 = vector.shape_cast %98 : vector<1x10x1xf32> to vector<10x1xf32>
    %100 = vector.broadcast %99 : vector<10x1xf32> to vector<10x256xf32>
    %101 = arith.addf %96, %100 : vector<10x256xf32>
    %102 = arith.index_cast %c7_i32 : i32 to index
    %c0_54 = arith.constant 0 : index
    %c0_55 = arith.constant 0 : index
    %103 = vector.load %arg4[%102, %c0_54, %c0_55] : memref<16x10x256xf32, #tpu.memory_space<vmem>>, vector<1x10x256xf32>
    %104 = vector.shape_cast %103 : vector<1x10x256xf32> to vector<10x256xf32>
    %105 = vector.shape_cast %101 : vector<10x256xf32> to vector<1x10x256xf32>
    tpu.vector_store %arg4[%102, %c0_54, %c0_55], %105 {strides = array<i32>} : memref<16x10x256xf32, #tpu.memory_space<vmem>>, vector<1x10x256xf32>,
    %c8_i32 = arith.constant 8 : i32
    %106 = arith.index_cast %c8_i32 : i32 to index
    %c0_56 = arith.constant 0 : index
    %c0_57 = arith.constant 0 : index
    %107 = vector.load %arg2[%106, %c0_56, %c0_57] : memref<16x10x80xf32, #tpu.memory_space<vmem>>, vector<1x10x80xf32>
    %108 = vector.shape_cast %107 : vector<1x10x80xf32> to vector<10x80xf32>
    %cst_58 = arith.constant dense<0.000000e+00> : vector<10x256xf32>
    %109 = tpu.matmul %108, %1, %cst_58 {dimension_numbers = #tpu.dot_dimension_numbers<[1], [0], [0], [1], [0, 0, 1, 1], [], []>} : vector<10x80xf32>, vector<80x256xf32>, vector<10x256xf32> -> vector<10x256xf32>
    %110 = arith.index_cast %c8_i32 : i32 to index
    %c0_59 = arith.constant 0 : index
    %c0_60 = arith.constant 0 : index
    %111 = vector.load %arg3[%110, %c0_59, %c0_60] : memref<16x10x1xf32, #tpu.memory_space<vmem>>, vector<1x10x1xf32>
    %112 = vector.shape_cast %111 : vector<1x10x1xf32> to vector<10x1xf32>
    %113 = vector.broadcast %112 : vector<10x1xf32> to vector<10x256xf32>
    %114 = arith.addf %109, %113 : vector<10x256xf32>
    %115 = arith.index_cast %c8_i32 : i32 to index
    %c0_61 = arith.constant 0 : index
    %c0_62 = arith.constant 0 : index
    %116 = vector.load %arg4[%115, %c0_61, %c0_62] : memref<16x10x256xf32, #tpu.memory_space<vmem>>, vector<1x10x256xf32>
    %117 = vector.shape_cast %116 : vector<1x10x256xf32> to vector<10x256xf32>
    %118 = vector.shape_cast %114 : vector<10x256xf32> to vector<1x10x256xf32>
    tpu.vector_store %arg4[%115, %c0_61, %c0_62], %118 {strides = array<i32>} : memref<16x10x256xf32, #tpu.memory_space<vmem>>, vector<1x10x256xf32>,
    %c9_i32 = arith.constant 9 : i32
    %119 = arith.index_cast %c9_i32 : i32 to index
    %c0_63 = arith.constant 0 : index
    %c0_64 = arith.constant 0 : index
    %120 = vector.load %arg2[%119, %c0_63, %c0_64] : memref<16x10x80xf32, #tpu.memory_space<vmem>>, vector<1x10x80xf32>
    %121 = vector.shape_cast %120 : vector<1x10x80xf32> to vector<10x80xf32>
    %cst_65 = arith.constant dense<0.000000e+00> : vector<10x256xf32>
    %122 = tpu.matmul %121, %1, %cst_65 {dimension_numbers = #tpu.dot_dimension_numbers<[1], [0], [0], [1], [0, 0, 1, 1], [], []>} : vector<10x80xf32>, vector<80x256xf32>, vector<10x256xf32> -> vector<10x256xf32>
    %123 = arith.index_cast %c9_i32 : i32 to index
    %c0_66 = arith.constant 0 : index
    %c0_67 = arith.constant 0 : index
    %124 = vector.load %arg3[%123, %c0_66, %c0_67] : memref<16x10x1xf32, #tpu.memory_space<vmem>>, vector<1x10x1xf32>
    %125 = vector.shape_cast %124 : vector<1x10x1xf32> to vector<10x1xf32>
    %126 = vector.broadcast %125 : vector<10x1xf32> to vector<10x256xf32>
    %127 = arith.addf %122, %126 : vector<10x256xf32>
    %128 = arith.index_cast %c9_i32 : i32 to index
    %c0_68 = arith.constant 0 : index
    %c0_69 = arith.constant 0 : index
    %129 = vector.load %arg4[%128, %c0_68, %c0_69] : memref<16x10x256xf32, #tpu.memory_space<vmem>>, vector<1x10x256xf32>
    %130 = vector.shape_cast %129 : vector<1x10x256xf32> to vector<10x256xf32>
    %131 = vector.shape_cast %127 : vector<10x256xf32> to vector<1x10x256xf32>
    tpu.vector_store %arg4[%128, %c0_68, %c0_69], %131 {strides = array<i32>} : memref<16x10x256xf32, #tpu.memory_space<vmem>>, vector<1x10x256xf32>,
    %c10_i32 = arith.constant 10 : i32
    %132 = arith.index_cast %c10_i32 : i32 to index
    %c0_70 = arith.constant 0 : index
    %c0_71 = arith.constant 0 : index
    %133 = vector.load %arg2[%132, %c0_70, %c0_71] : memref<16x10x80xf32, #tpu.memory_space<vmem>>, vector<1x10x80xf32>
    %134 = vector.shape_cast %133 : vector<1x10x80xf32> to vector<10x80xf32>
    %cst_72 = arith.constant dense<0.000000e+00> : vector<10x256xf32>
    %135 = tpu.matmul %134, %1, %cst_72 {dimension_numbers = #tpu.dot_dimension_numbers<[1], [0], [0], [1], [0, 0, 1, 1], [], []>} : vector<10x80xf32>, vector<80x256xf32>, vector<10x256xf32> -> vector<10x256xf32>
    %136 = arith.index_cast %c10_i32 : i32 to index
    %c0_73 = arith.constant 0 : index
    %c0_74 = arith.constant 0 : index
    %137 = vector.load %arg3[%136, %c0_73, %c0_74] : memref<16x10x1xf32, #tpu.memory_space<vmem>>, vector<1x10x1xf32>
    %138 = vector.shape_cast %137 : vector<1x10x1xf32> to vector<10x1xf32>
    %139 = vector.broadcast %138 : vector<10x1xf32> to vector<10x256xf32>
    %140 = arith.addf %135, %139 : vector<10x256xf32>
    %141 = arith.index_cast %c10_i32 : i32 to index
    %c0_75 = arith.constant 0 : index
    %c0_76 = arith.constant 0 : index
    %142 = vector.load %arg4[%141, %c0_75, %c0_76] : memref<16x10x256xf32, #tpu.memory_space<vmem>>, vector<1x10x256xf32>
    %143 = vector.shape_cast %142 : vector<1x10x256xf32> to vector<10x256xf32>
    %144 = vector.shape_cast %140 : vector<10x256xf32> to vector<1x10x256xf32>
    tpu.vector_store %arg4[%141, %c0_75, %c0_76], %144 {strides = array<i32>} : memref<16x10x256xf32, #tpu.memory_space<vmem>>, vector<1x10x256xf32>,
    %c11_i32 = arith.constant 11 : i32
    %145 = arith.index_cast %c11_i32 : i32 to index
    %c0_77 = arith.constant 0 : index
    %c0_78 = arith.constant 0 : index
    %146 = vector.load %arg2[%145, %c0_77, %c0_78] : memref<16x10x80xf32, #tpu.memory_space<vmem>>, vector<1x10x80xf32>
    %147 = vector.shape_cast %146 : vector<1x10x80xf32> to vector<10x80xf32>
    %cst_79 = arith.constant dense<0.000000e+00> : vector<10x256xf32>
    %148 = tpu.matmul %147, %1, %cst_79 {dimension_numbers = #tpu.dot_dimension_numbers<[1], [0], [0], [1], [0, 0, 1, 1], [], []>} : vector<10x80xf32>, vector<80x256xf32>, vector<10x256xf32> -> vector<10x256xf32>
    %149 = arith.index_cast %c11_i32 : i32 to index
    %c0_80 = arith.constant 0 : index
    %c0_81 = arith.constant 0 : index
    %150 = vector.load %arg3[%149, %c0_80, %c0_81] : memref<16x10x1xf32, #tpu.memory_space<vmem>>, vector<1x10x1xf32>
    %151 = vector.shape_cast %150 : vector<1x10x1xf32> to vector<10x1xf32>
    %152 = vector.broadcast %151 : vector<10x1xf32> to vector<10x256xf32>
    %153 = arith.addf %148, %152 : vector<10x256xf32>
    %154 = arith.index_cast %c11_i32 : i32 to index
    %c0_82 = arith.constant 0 : index
    %c0_83 = arith.constant 0 : index
    %155 = vector.load %arg4[%154, %c0_82, %c0_83] : memref<16x10x256xf32, #tpu.memory_space<vmem>>, vector<1x10x256xf32>
    %156 = vector.shape_cast %155 : vector<1x10x256xf32> to vector<10x256xf32>
    %157 = vector.shape_cast %153 : vector<10x256xf32> to vector<1x10x256xf32>
    tpu.vector_store %arg4[%154, %c0_82, %c0_83], %157 {strides = array<i32>} : memref<16x10x256xf32, #tpu.memory_space<vmem>>, vector<1x10x256xf32>,
    %c12_i32 = arith.constant 12 : i32
    %158 = arith.index_cast %c12_i32 : i32 to index
    %c0_84 = arith.constant 0 : index
    %c0_85 = arith.constant 0 : index
    %159 = vector.load %arg2[%158, %c0_84, %c0_85] : memref<16x10x80xf32, #tpu.memory_space<vmem>>, vector<1x10x80xf32>
    %160 = vector.shape_cast %159 : vector<1x10x80xf32> to vector<10x80xf32>
    %cst_86 = arith.constant dense<0.000000e+00> : vector<10x256xf32>
    %161 = tpu.matmul %160, %1, %cst_86 {dimension_numbers = #tpu.dot_dimension_numbers<[1], [0], [0], [1], [0, 0, 1, 1], [], []>} : vector<10x80xf32>, vector<80x256xf32>, vector<10x256xf32> -> vector<10x256xf32>
    %162 = arith.index_cast %c12_i32 : i32 to index
    %c0_87 = arith.constant 0 : index
    %c0_88 = arith.constant 0 : index
    %163 = vector.load %arg3[%162, %c0_87, %c0_88] : memref<16x10x1xf32, #tpu.memory_space<vmem>>, vector<1x10x1xf32>
    %164 = vector.shape_cast %163 : vector<1x10x1xf32> to vector<10x1xf32>
    %165 = vector.broadcast %164 : vector<10x1xf32> to vector<10x256xf32>
    %166 = arith.addf %161, %165 : vector<10x256xf32>
    %167 = arith.index_cast %c12_i32 : i32 to index
    %c0_89 = arith.constant 0 : index
    %c0_90 = arith.constant 0 : index
    %168 = vector.load %arg4[%167, %c0_89, %c0_90] : memref<16x10x256xf32, #tpu.memory_space<vmem>>, vector<1x10x256xf32>
    %169 = vector.shape_cast %168 : vector<1x10x256xf32> to vector<10x256xf32>
    %170 = vector.shape_cast %166 : vector<10x256xf32> to vector<1x10x256xf32>
    tpu.vector_store %arg4[%167, %c0_89, %c0_90], %170 {strides = array<i32>} : memref<16x10x256xf32, #tpu.memory_space<vmem>>, vector<1x10x256xf32>,
    %c13_i32 = arith.constant 13 : i32
    %171 = arith.index_cast %c13_i32 : i32 to index
    %c0_91 = arith.constant 0 : index
    %c0_92 = arith.constant 0 : index
    %172 = vector.load %arg2[%171, %c0_91, %c0_92] : memref<16x10x80xf32, #tpu.memory_space<vmem>>, vector<1x10x80xf32>
    %173 = vector.shape_cast %172 : vector<1x10x80xf32> to vector<10x80xf32>
    %cst_93 = arith.constant dense<0.000000e+00> : vector<10x256xf32>
    %174 = tpu.matmul %173, %1, %cst_93 {dimension_numbers = #tpu.dot_dimension_numbers<[1], [0], [0], [1], [0, 0, 1, 1], [], []>} : vector<10x80xf32>, vector<80x256xf32>, vector<10x256xf32> -> vector<10x256xf32>
    %175 = arith.index_cast %c13_i32 : i32 to index
    %c0_94 = arith.constant 0 : index
    %c0_95 = arith.constant 0 : index
    %176 = vector.load %arg3[%175, %c0_94, %c0_95] : memref<16x10x1xf32, #tpu.memory_space<vmem>>, vector<1x10x1xf32>
    %177 = vector.shape_cast %176 : vector<1x10x1xf32> to vector<10x1xf32>
    %178 = vector.broadcast %177 : vector<10x1xf32> to vector<10x256xf32>
    %179 = arith.addf %174, %178 : vector<10x256xf32>
    %180 = arith.index_cast %c13_i32 : i32 to index
    %c0_96 = arith.constant 0 : index
    %c0_97 = arith.constant 0 : index
    %181 = vector.load %arg4[%180, %c0_96, %c0_97] : memref<16x10x256xf32, #tpu.memory_space<vmem>>, vector<1x10x256xf32>
    %182 = vector.shape_cast %181 : vector<1x10x256xf32> to vector<10x256xf32>
    %183 = vector.shape_cast %179 : vector<10x256xf32> to vector<1x10x256xf32>
    tpu.vector_store %arg4[%180, %c0_96, %c0_97], %183 {strides = array<i32>} : memref<16x10x256xf32, #tpu.memory_space<vmem>>, vector<1x10x256xf32>,
    %c14_i32 = arith.constant 14 : i32
    %184 = arith.index_cast %c14_i32 : i32 to index
    %c0_98 = arith.constant 0 : index
    %c0_99 = arith.constant 0 : index
    %185 = vector.load %arg2[%184, %c0_98, %c0_99] : memref<16x10x80xf32, #tpu.memory_space<vmem>>, vector<1x10x80xf32>
    %186 = vector.shape_cast %185 : vector<1x10x80xf32> to vector<10x80xf32>
    %cst_100 = arith.constant dense<0.000000e+00> : vector<10x256xf32>
    %187 = tpu.matmul %186, %1, %cst_100 {dimension_numbers = #tpu.dot_dimension_numbers<[1], [0], [0], [1], [0, 0, 1, 1], [], []>} : vector<10x80xf32>, vector<80x256xf32>, vector<10x256xf32> -> vector<10x256xf32>
    %188 = arith.index_cast %c14_i32 : i32 to index
    %c0_101 = arith.constant 0 : index
    %c0_102 = arith.constant 0 : index
    %189 = vector.load %arg3[%188, %c0_101, %c0_102] : memref<16x10x1xf32, #tpu.memory_space<vmem>>, vector<1x10x1xf32>
    %190 = vector.shape_cast %189 : vector<1x10x1xf32> to vector<10x1xf32>
    %191 = vector.broadcast %190 : vector<10x1xf32> to vector<10x256xf32>
    %192 = arith.addf %187, %191 : vector<10x256xf32>
    %193 = arith.index_cast %c14_i32 : i32 to index
    %c0_103 = arith.constant 0 : index
    %c0_104 = arith.constant 0 : index
    %194 = vector.load %arg4[%193, %c0_103, %c0_104] : memref<16x10x256xf32, #tpu.memory_space<vmem>>, vector<1x10x256xf32>
    %195 = vector.shape_cast %194 : vector<1x10x256xf32> to vector<10x256xf32>
    %196 = vector.shape_cast %192 : vector<10x256xf32> to vector<1x10x256xf32>
    tpu.vector_store %arg4[%193, %c0_103, %c0_104], %196 {strides = array<i32>} : memref<16x10x256xf32, #tpu.memory_space<vmem>>, vector<1x10x256xf32>,
    %c15_i32 = arith.constant 15 : i32
    %197 = arith.index_cast %c15_i32 : i32 to index
    %c0_105 = arith.constant 0 : index
    %c0_106 = arith.constant 0 : index
    %198 = vector.load %arg2[%197, %c0_105, %c0_106] : memref<16x10x80xf32, #tpu.memory_space<vmem>>, vector<1x10x80xf32>
    %199 = vector.shape_cast %198 : vector<1x10x80xf32> to vector<10x80xf32>
    %cst_107 = arith.constant dense<0.000000e+00> : vector<10x256xf32>
    %200 = tpu.matmul %199, %1, %cst_107 {dimension_numbers = #tpu.dot_dimension_numbers<[1], [0], [0], [1], [0, 0, 1, 1], [], []>} : vector<10x80xf32>, vector<80x256xf32>, vector<10x256xf32> -> vector<10x256xf32>
    %201 = arith.index_cast %c15_i32 : i32 to index
    %c0_108 = arith.constant 0 : index
    %c0_109 = arith.constant 0 : index
    %202 = vector.load %arg3[%201, %c0_108, %c0_109] : memref<16x10x1xf32, #tpu.memory_space<vmem>>, vector<1x10x1xf32>
    %203 = vector.shape_cast %202 : vector<1x10x1xf32> to vector<10x1xf32>
    %204 = vector.broadcast %203 : vector<10x1xf32> to vector<10x256xf32>
    %205 = arith.addf %200, %204 : vector<10x256xf32>
    %206 = arith.index_cast %c15_i32 : i32 to index
    %c0_110 = arith.constant 0 : index
    %c0_111 = arith.constant 0 : index
    %207 = vector.load %arg4[%206, %c0_110, %c0_111] : memref<16x10x256xf32, #tpu.memory_space<vmem>>, vector<1x10x256xf32>
    %208 = vector.shape_cast %207 : vector<1x10x256xf32> to vector<10x256xf32>
    %209 = vector.shape_cast %205 : vector<10x256xf32> to vector<1x10x256xf32>
    tpu.vector_store %arg4[%206, %c0_110, %c0_111], %209 {strides = array<i32>} : memref<16x10x256xf32, #tpu.memory_space<vmem>>, vector<1x10x256xf32>,
    %c16_i32 = arith.constant 16 : i32
    return
  }
  func.func @transform_0(%arg0: i32) -> (i32, i32) {
    %c0_i32 = arith.constant 0 : i32
    %c0_i32_0 = arith.constant 0 : i32
    return %arg0, %c0_i32 : i32, i32
  }
  func.func @transform_1(%arg0: i32) -> (i32, i32, i32) {
    %c0_i32 = arith.constant 0 : i32
    %c0_i32_0 = arith.constant 0 : i32
    %c0_i32_1 = arith.constant 0 : i32
    %c0_i32_2 = arith.constant 0 : i32
    return %c0_i32, %c0_i32_0, %c0_i32_1 : i32, i32, i32
  }
  func.func @transform_2(%arg0: i32) -> (i32, i32, i32) {
    %c0_i32 = arith.constant 0 : i32
    %c0_i32_0 = arith.constant 0 : i32
    %c0_i32_1 = arith.constant 0 : i32
    %c0_i32_2 = arith.constant 0 : i32
    return %c0_i32, %c0_i32_0, %c0_i32_1 : i32, i32, i32
  }
  func.func @transform_3(%arg0: i32) -> (i32, i32, i32) {
    %c0_i32 = arith.constant 0 : i32
    %c0_i32_0 = arith.constant 0 : i32
    %c0_i32_1 = arith.constant 0 : i32
    return %c0_i32, %c0_i32_0, %arg0 : i32, i32, i32
  }
}

</mosaic_0001>

<bundles_post_ra>
// kernel: tpu_custom_call.1
= control target key start
LH: loop header
LB: loop body
LE: loop exit
PB: predicated region body
PF: predicated region fallthrough
CT: control target
= control target key end

     0   :  { %vm60_vm0 = vcmask 654336   ;;  %v2044_v34 = vmov 0   ;;  %s3857_s0 = inlined_call_operand.vmem [shape: f32[256,80], index: 0, kind: input, shape index: {}]   ;;  %s3858_s1 = inlined_call_operand.vmem [shape: f32[16,10,80], index: 1, kind: input, shape index: {}]   ;;  %s3859_s2 = inlined_call_operand.vmem [shape: f32[16,10,1], index: 2, kind: input, shape index: {}]   ;;  %s3860_s3 = inlined_call_operand.vmem [shape: f32[16,10,256], index: 3, kind: output, shape index: {}]  }
   0x1   :  { %v2068_v0 = vld [vmem:[%s3857_s0 + $0x78] sm:$0xff]  ;;  %v2086_v2 = vld [vmem:[%s3857_s0 + $0x70] sm:$0xff]  ;;  %v2104_v4 = vld [vmem:[%s3857_s0 + $0x68] sm:$0xff]  ;;  %2010 = vset.pattern.permute.xlu1 %v2044_v34  ;;  %2009 = vset.pattern.permute.xlu0 %v2044_v34 }
   0x2   :  { %v2073_v1 = vld [vmem:[%s3857_s0 + $0xf8] sm:$0xff]  ;;  %1312 = vmatpush.xpose.msk.msra.mxu0 %vm60_vm0, %v2068_v0  ;;  %1352 = vmatpush.xpose.msk.msra.mxu2 %vm60_vm0, %v2068_v0  ;;  %v2091_v3 = vld [vmem:[%s3857_s0 + $0xf0] sm:$0xff]  ;;  %v2109_v5 = vld [vmem:[%s3857_s0 + $0xe8] sm:$0xff] }
   0x3   :  { %1330 = vmatpush.xpose.msk.msra.mxu1 %vm60_vm0, %v2073_v1  ;;  %1370 = vmatpush.xpose.msk.msra.mxu3 %vm60_vm0, %v2073_v1  ;;  %v2122_v6 = vld [vmem:[%s3857_s0 + $0x60] sm:$0xff]  ;;  %v2140_v8 = vld [vmem:[%s3857_s0 + $0x58] sm:$0xff]  ;;  %v2158_v10 = vld [vmem:[%s3857_s0 + $0x50] sm:$0xff] }
   0x4   :  { %v2127_v7 = vld [vmem:[%s3857_s0 + $0xe0] sm:$0xff]  ;;  %v2145_v9 = vld [vmem:[%s3857_s0 + $0xd8] sm:$0xff]  ;;  %v2163_v11 = vld [vmem:[%s3857_s0 + $0xd0] sm:$0xff]  ;;  %2011 = vset.pattern.permute.xlu2 %v2044_v34 }
   0x5   :  { %v2176_v12 = vld [vmem:[%s3857_s0 + $0x48] sm:$0xff]  ;;  %v2194_v14 = vld [vmem:[%s3857_s0 + $0x40] sm:$0xff]  ;;  %v2212_v16 = vld [vmem:[%s3857_s0 + $0x38] sm:$0xff] }
   0x6   :  { %1313 = vmatpush.xpose.msk.msra.mxu0 %vm60_vm0, %v2086_v2  ;;  %1353 = vmatpush.xpose.msk.msra.mxu2 %vm60_vm0, %v2086_v2  ;;  %v2181_v13 = vld [vmem:[%s3857_s0 + $0xc8] sm:$0xff]  ;;  %v2199_v15 = vld [vmem:[%s3857_s0 + $0xc0] sm:$0xff]  ;;  %v2217_v17 = vld [vmem:[%s3857_s0 + $0xb8] sm:$0xff] }
   0x7   :  { %1331 = vmatpush.xpose.msk.msra.mxu1 %vm60_vm0, %v2091_v3  ;;  %1371 = vmatpush.xpose.msk.msra.mxu3 %vm60_vm0, %v2091_v3  ;;  %v2230_v18 = vld [vmem:[%s3857_s0 + $0x30] sm:$0xff]  ;;  %v2248_v20 = vld [vmem:[%s3857_s0 + $0x28] sm:$0xff]  ;;  %v2266_v22 = vld [vmem:[%s3857_s0 + $0x20] sm:$0xff] }
   0x8   :  { %v2235_v19 = vld [vmem:[%s3857_s0 + $0xb0] sm:$0xff]  ;;  %v2253_v21 = vld [vmem:[%s3857_s0 + $0xa8] sm:$0xff]  ;;  %v2271_v23 = vld [vmem:[%s3857_s0 + $0xa0] sm:$0xff] }
   0x9   :  { %v2284_v24 = vld [vmem:[%s3857_s0 + $0x18] sm:$0xff]  ;;  %v2302_v26 = vld [vmem:[%s3857_s0 + $0x10] sm:$0xff]  ;;  %v2320_v28 = vld [vmem:[%s3857_s0 + $0x8] sm:$0xff] }
   0xa   :  { %1314 = vmatpush.xpose.msk.msra.mxu0 %vm60_vm0, %v2104_v4  ;;  %1354 = vmatpush.xpose.msk.msra.mxu2 %vm60_vm0, %v2104_v4  ;;  %v2289_v25 = vld [vmem:[%s3857_s0 + $0x98] sm:$0xff]  ;;  %v2307_v27 = vld [vmem:[%s3857_s0 + $0x90] sm:$0xff]  ;;  %v2325_v29 = vld [vmem:[%s3857_s0 + $0x88] sm:$0xff] }
   0xb   :  { %1332 = vmatpush.xpose.msk.msra.mxu1 %vm60_vm0, %v2109_v5  ;;  %1372 = vmatpush.xpose.msk.msra.mxu3 %vm60_vm0, %v2109_v5  ;;  %v2338_v30 = vld [vmem:[%s3857_s0] sm:$0xff]  ;;  %v1348_v33 = vld [vmem:[%s3858_s1 + $0x10] sm:$0xff]  ;;  %v47_v37 = vld [vmem:[%s3858_s1 + $0x8] sm:$0x3] }
   0xc   :  { %v2343_v31 = vld [vmem:[%s3857_s0 + $0x80] sm:$0xff]  ;;  %v1350_v35 = vld [vmem:[%s3859_s2 + $0x10] sm:$0xff]  ;;  %v1349_v38 = vld [vmem:[%s3858_s1 + $0x18] sm:$0x3] }
   0xd   :  { %v46_v32 = vld [vmem:[%s3858_s1] sm:$0xff]  ;;  %221 = vperm.xlu1 %2010, %v1350_v35   ;;  %v1436_v40 = vld [vmem:[%s3858_s1 + $0x30] sm:$0xff]  ;;  %v1351_v41 = vld [vmem:[%s3859_s2 + $0x18] sm:$0x3] }
   0xe   :  { %1315 = vmatpush.xpose.msk.msra.mxu0 %vm60_vm0, %v2122_v6  ;;  %1355 = vmatpush.xpose.msk.msra.mxu2 %vm60_vm0, %v2122_v6  ;;  %v48_v36 = vld [vmem:[%s3859_s2] sm:$0xff]  ;;  %v49_v42 = vld [vmem:[%s3859_s2 + $0x8] sm:$0x3]  ;;  %v1438_v43 = vld [vmem:[%s3859_s2 + $0x30] sm:$0xff] }
   0xf   :  { %1333 = vmatpush.xpose.msk.msra.mxu1 %vm60_vm0, %v2127_v7  ;;  %1373 = vmatpush.xpose.msk.msra.mxu3 %vm60_vm0, %v2127_v7  ;;  %v1392_v39 = vld [vmem:[%s3858_s1 + $0x20] sm:$0xff]  ;;  %v1393_v45 = vld [vmem:[%s3858_s1 + $0x28] sm:$0x3]  ;;  %v1437_v46 = vld [vmem:[%s3858_s1 + $0x38] sm:$0x3] }
  0x10   :  { %52 = vperm.xlu0 %2009, %v48_v36   ;;  %v1394_v44 = vld [vmem:[%s3859_s2 + $0x20] sm:$0xff]  ;;  %v1524_v48 = vld [vmem:[%s3858_s1 + $0x50] sm:$0xff]  ;;  %v1439_v49 = vld [vmem:[%s3859_s2 + $0x38] sm:$0x3] }
  0x11   :  { %294 = vperm.xlu2 %2011, %v1394_v44   ;;  %v1480_v47 = vld [vmem:[%s3858_s1 + $0x40] sm:$0xff]  ;;  %v1526_v60 = vld [vmem:[%s3859_s2 + $0x50] sm:$0xff]  ;;  %v1395_v61 = vld [vmem:[%s3859_s2 + $0x28] sm:$0x3] }
  0x12   :  { %1316 = vmatpush.xpose.msk.msra.mxu0 %vm60_vm0, %v2140_v8  ;;  %1356 = vmatpush.xpose.msk.msra.mxu2 %vm60_vm0, %v2140_v8  ;;  %v1482_v62 = vld [vmem:[%s3859_s2 + $0x40] sm:$0xff]  ;;  %v1481_v63 = vld [vmem:[%s3858_s1 + $0x48] sm:$0x3]  ;;  %v1612_v34 = vld [vmem:[%s3858_s1 + $0x70] sm:$0xff] }
  0x13   :  { %1334 = vmatpush.xpose.msk.msra.mxu1 %vm60_vm0, %v2145_v9  ;;  %1374 = vmatpush.xpose.msk.msra.mxu3 %vm60_vm0, %v2145_v9 }
  0x15   :  { %226 = vperm.xlu1 %2010, %v1351_v41  }
  0x16   :  { %1317 = vmatpush.xpose.msk.msra.mxu0 %vm60_vm0, %v2158_v10  ;;  %1357 = vmatpush.xpose.msk.msra.mxu2 %vm60_vm0, %v2158_v10 }
  0x17   :  { %1335 = vmatpush.xpose.msk.msra.mxu1 %vm60_vm0, %v2163_v11  ;;  %1375 = vmatpush.xpose.msk.msra.mxu3 %vm60_vm0, %v2163_v11 }
  0x18   :  { %57 = vperm.xlu0 %2009, %v49_v42  }
  0x19   :  { %299 = vperm.xlu2 %2011, %v1395_v61  }
  0x1a   :  { %1318 = vmatpush.xpose.msk.msra.mxu0 %vm60_vm0, %v2176_v12  ;;  %1358 = vmatpush.xpose.msk.msra.mxu2 %vm60_vm0, %v2176_v12 }
  0x1b   :  { %1336 = vmatpush.xpose.msk.msra.mxu1 %vm60_vm0, %v2181_v13  ;;  %1376 = vmatpush.xpose.msk.msra.mxu3 %vm60_vm0, %v2181_v13 }
  0x1d   :  { %372 = vperm.xlu1 %2010, %v1439_v49  }
  0x1e   :  { %1319 = vmatpush.xpose.msk.msra.mxu0 %vm60_vm0, %v2194_v14  ;;  %1359 = vmatpush.xpose.msk.msra.mxu2 %vm60_vm0, %v2194_v14 }
  0x1f   :  { %1337 = vmatpush.xpose.msk.msra.mxu1 %vm60_vm0, %v2199_v15  ;;  %1377 = vmatpush.xpose.msk.msra.mxu3 %vm60_vm0, %v2199_v15 }
  0x20   :  { %367 = vperm.xlu0 %2009, %v1438_v43  }
  0x21   :  { %440 = vperm.xlu2 %2011, %v1482_v62  }
  0x22   :  { %1320 = vmatpush.xpose.msk.msra.mxu0 %vm60_vm0, %v2212_v16  ;;  %1360 = vmatpush.xpose.msk.msra.mxu2 %vm60_vm0, %v2212_v16 }
  0x23   :  { %1338 = vmatpush.xpose.msk.msra.mxu1 %vm60_vm0, %v2217_v17  ;;  %1378 = vmatpush.xpose.msk.msra.mxu3 %vm60_vm0, %v2217_v17 }
  0x25   :  { %513 = vperm.xlu1 %2010, %v1526_v60  }
  0x26   :  { %1321 = vmatpush.xpose.msk.msra.mxu0 %vm60_vm0, %v2230_v18  ;;  %1361 = vmatpush.xpose.msk.msra.mxu2 %vm60_vm0, %v2230_v18 }
  0x27   :  { %1339 = vmatpush.xpose.msk.msra.mxu1 %vm60_vm0, %v2235_v19  ;;  %1379 = vmatpush.xpose.msk.msra.mxu3 %vm60_vm0, %v2235_v19 }
  0x2a   :  { %1322 = vmatpush.xpose.msk.msra.mxu0 %vm60_vm0, %v2248_v20  ;;  %1362 = vmatpush.xpose.msk.msra.mxu2 %vm60_vm0, %v2248_v20 }
  0x2b   :  { %1340 = vmatpush.xpose.msk.msra.mxu1 %vm60_vm0, %v2253_v21  ;;  %1380 = vmatpush.xpose.msk.msra.mxu3 %vm60_vm0, %v2253_v21 }
  0x2e   :  { %1323 = vmatpush.xpose.msk.msra.mxu0 %vm60_vm0, %v2266_v22  ;;  %1363 = vmatpush.xpose.msk.msra.mxu2 %vm60_vm0, %v2266_v22 }
  0x2f   :  { %1341 = vmatpush.xpose.msk.msra.mxu1 %vm60_vm0, %v2271_v23  ;;  %1381 = vmatpush.xpose.msk.msra.mxu3 %vm60_vm0, %v2271_v23 }
  0x32   :  { %1324 = vmatpush.xpose.msk.msra.mxu0 %vm60_vm0, %v2284_v24  ;;  %1364 = vmatpush.xpose.msk.msra.mxu2 %vm60_vm0, %v2284_v24 }
  0x33   :  { %1342 = vmatpush.xpose.msk.msra.mxu1 %vm60_vm0, %v2289_v25  ;;  %1382 = vmatpush.xpose.msk.msra.mxu3 %vm60_vm0, %v2289_v25 }
  0x36   :  { %1325 = vmatpush.xpose.msk.msra.mxu0 %vm60_vm0, %v2302_v26  ;;  %1365 = vmatpush.xpose.msk.msra.mxu2 %vm60_vm0, %v2302_v26 }
  0x37   :  { %1343 = vmatpush.xpose.msk.msra.mxu1 %vm60_vm0, %v2307_v27  ;;  %1383 = vmatpush.xpose.msk.msra.mxu3 %vm60_vm0, %v2307_v27 }
  0x3a   :  { %1326 = vmatpush.xpose.msk.msra.mxu0 %vm60_vm0, %v2320_v28  ;;  %1366 = vmatpush.xpose.msk.msra.mxu2 %vm60_vm0, %v2320_v28 }
  0x3b   :  { %1344 = vmatpush.xpose.msk.msra.mxu1 %vm60_vm0, %v2325_v29  ;;  %1384 = vmatpush.xpose.msk.msra.mxu3 %vm60_vm0, %v2325_v29 }
  0x3e   :  { %1327 = vmatpush.xpose.msk.msra.mxu0 %vm60_vm0, %v2338_v30  ;;  %1367 = vmatpush.xpose.msk.msra.mxu2 %vm60_vm0, %v2338_v30 }
  0x3f   :  { %1345 = vmatpush.xpose.msk.msra.mxu1 %vm60_vm0, %v2343_v31  ;;  %1385 = vmatpush.xpose.msk.msra.mxu3 %vm60_vm0, %v2343_v31 }
  0x41   :  { %1328 = vmatmul.msk.f32.vlgmr.msra.gmra.mxu0 %vm60_vm0, %v46_v32  ;;  %1368 = vmatmul.msk.f32.vlgmr.msra.gmra.mxu2 %vm60_vm0, %v1348_v33 }
  0x42   :  { %1396 = vmatpush.xpose.msk.msrb.mxu0 %vm60_vm0, %v2068_v0  ;;  %1440 = vmatpush.xpose.msk.msrb.mxu2 %vm60_vm0, %v2068_v0 }
  0x43   :  { %1414 = vmatpush.xpose.msk.msrb.mxu1 %vm60_vm0, %v2073_v1  ;;  %1458 = vmatpush.xpose.msk.msrb.mxu3 %vm60_vm0, %v2073_v1 }
  0x44   :  { %1346 = vmatmul.msk.f32.vlgmr.msra.gmra.mxu1 %vm60_vm0, %v46_v32  ;;  %1386 = vmatmul.msk.f32.vlgmr.msra.gmra.mxu3 %vm60_vm0, %v1348_v33  ;;  %v1525_v32 = vld [vmem:[%s3858_s1 + $0x58] sm:$0x3]  ;;  %v1568_v33 = vld [vmem:[%s3858_s1 + $0x60] sm:$0xff] }
  0x46   :  { %1397 = vmatpush.xpose.msk.msrb.mxu0 %vm60_vm0, %v2086_v2  ;;  %1441 = vmatpush.xpose.msk.msrb.mxu2 %vm60_vm0, %v2086_v2 }
  0x47   :  { %1415 = vmatpush.xpose.msk.msrb.mxu1 %vm60_vm0, %v2091_v3  ;;  %1459 = vmatpush.xpose.msk.msrb.mxu3 %vm60_vm0, %v2091_v3 }
  0x49   :  { %1329 = vmatmul.msk.f32.gmra.mxu0 %vm60_vm0, %v47_v37  ;;  %1369 = vmatmul.msk.f32.gmra.mxu2 %vm60_vm0, %v1349_v38 }
  0x4a   :  { %1398 = vmatpush.xpose.msk.msrb.mxu0 %vm60_vm0, %v2104_v4  ;;  %1442 = vmatpush.xpose.msk.msrb.mxu2 %vm60_vm0, %v2104_v4 }
  0x4b   :  { %1416 = vmatpush.xpose.msk.msrb.mxu1 %vm60_vm0, %v2109_v5  ;;  %1460 = vmatpush.xpose.msk.msrb.mxu3 %vm60_vm0, %v2109_v5 }
  0x4c   :  { %1347 = vmatmul.msk.f32.gmra.mxu1 %vm60_vm0, %v47_v37  ;;  %1387 = vmatmul.msk.f32.gmra.mxu3 %vm60_vm0, %v1349_v38 }
  0x4e   :  { %1399 = vmatpush.xpose.msk.msrb.mxu0 %vm60_vm0, %v2122_v6  ;;  %1443 = vmatpush.xpose.msk.msrb.mxu2 %vm60_vm0, %v2122_v6 }
  0x4f   :  { %1417 = vmatpush.xpose.msk.msrb.mxu1 %vm60_vm0, %v2127_v7  ;;  %1461 = vmatpush.xpose.msk.msrb.mxu3 %vm60_vm0, %v2127_v7 }
  0x52   :  { %1400 = vmatpush.xpose.msk.msrb.mxu0 %vm60_vm0, %v2140_v8  ;;  %1444 = vmatpush.xpose.msk.msrb.mxu2 %vm60_vm0, %v2140_v8 }
  0x53   :  { %1418 = vmatpush.xpose.msk.msrb.mxu1 %vm60_vm0, %v2145_v9  ;;  %1462 = vmatpush.xpose.msk.msrb.mxu3 %vm60_vm0, %v2145_v9 }
  0x56   :  { %1401 = vmatpush.xpose.msk.msrb.mxu0 %vm60_vm0, %v2158_v10  ;;  %1445 = vmatpush.xpose.msk.msrb.mxu2 %vm60_vm0, %v2158_v10 }
  0x57   :  { %1419 = vmatpush.xpose.msk.msrb.mxu1 %vm60_vm0, %v2163_v11  ;;  %1463 = vmatpush.xpose.msk.msrb.mxu3 %vm60_vm0, %v2163_v11 }
  0x5a   :  { %1402 = vmatpush.xpose.msk.msrb.mxu0 %vm60_vm0, %v2176_v12  ;;  %1446 = vmatpush.xpose.msk.msrb.mxu2 %vm60_vm0, %v2176_v12 }
  0x5b   :  { %1420 = vmatpush.xpose.msk.msrb.mxu1 %vm60_vm0, %v2181_v13  ;;  %1464 = vmatpush.xpose.msk.msrb.mxu3 %vm60_vm0, %v2181_v13 }
  0x5e   :  { %1403 = vmatpush.xpose.msk.msrb.mxu0 %vm60_vm0, %v2194_v14  ;;  %1447 = vmatpush.xpose.msk.msrb.mxu2 %vm60_vm0, %v2194_v14 }
  0x5f   :  { %1421 = vmatpush.xpose.msk.msrb.mxu1 %vm60_vm0, %v2199_v15  ;;  %1465 = vmatpush.xpose.msk.msrb.mxu3 %vm60_vm0, %v2199_v15 }
  0x62   :  { %1404 = vmatpush.xpose.msk.msrb.mxu0 %vm60_vm0, %v2212_v16  ;;  %1448 = vmatpush.xpose.msk.msrb.mxu2 %vm60_vm0, %v2212_v16 }
  0x63   :  { %1422 = vmatpush.xpose.msk.msrb.mxu1 %vm60_vm0, %v2217_v17  ;;  %1466 = vmatpush.xpose.msk.msrb.mxu3 %vm60_vm0, %v2217_v17 }
  0x66   :  { %1405 = vmatpush.xpose.msk.msrb.mxu0 %vm60_vm0, %v2230_v18  ;;  %1449 = vmatpush.xpose.msk.msrb.mxu2 %vm60_vm0, %v2230_v18 }
  0x67   :  { %1423 = vmatpush.xpose.msk.msrb.mxu1 %vm60_vm0, %v2235_v19  ;;  %1467 = vmatpush.xpose.msk.msrb.mxu3 %vm60_vm0, %v2235_v19 }
  0x6a   :  { %1406 = vmatpush.xpose.msk.msrb.mxu0 %vm60_vm0, %v2248_v20  ;;  %1450 = vmatpush.xpose.msk.msrb.mxu2 %vm60_vm0, %v2248_v20 }
  0x6b   :  { %1424 = vmatpush.xpose.msk.msrb.mxu1 %vm60_vm0, %v2253_v21  ;;  %1468 = vmatpush.xpose.msk.msrb.mxu3 %vm60_vm0, %v2253_v21 }
  0x6e   :  { %1407 = vmatpush.xpose.msk.msrb.mxu0 %vm60_vm0, %v2266_v22  ;;  %1451 = vmatpush.xpose.msk.msrb.mxu2 %vm60_vm0, %v2266_v22 }
  0x6f   :  { %1425 = vmatpush.xpose.msk.msrb.mxu1 %vm60_vm0, %v2271_v23  ;;  %1469 = vmatpush.xpose.msk.msrb.mxu3 %vm60_vm0, %v2271_v23 }
  0x72   :  { %1408 = vmatpush.xpose.msk.msrb.mxu0 %vm60_vm0, %v2284_v24  ;;  %1452 = vmatpush.xpose.msk.msrb.mxu2 %vm60_vm0, %v2284_v24 }
  0x73   :  { %1426 = vmatpush.xpose.msk.msrb.mxu1 %vm60_vm0, %v2289_v25  ;;  %1470 = vmatpush.xpose.msk.msrb.mxu3 %vm60_vm0, %v2289_v25 }
  0x76   :  { %1409 = vmatpush.xpose.msk.msrb.mxu0 %vm60_vm0, %v2302_v26  ;;  %1453 = vmatpush.xpose.msk.msrb.mxu2 %vm60_vm0, %v2302_v26 }
  0x77   :  { %1427 = vmatpush.xpose.msk.msrb.mxu1 %vm60_vm0, %v2307_v27  ;;  %1471 = vmatpush.xpose.msk.msrb.mxu3 %vm60_vm0, %v2307_v27 }
  0x7a   :  { %1410 = vmatpush.xpose.msk.msrb.mxu0 %vm60_vm0, %v2320_v28  ;;  %1454 = vmatpush.xpose.msk.msrb.mxu2 %vm60_vm0, %v2320_v28 }
  0x7b   :  { %1428 = vmatpush.xpose.msk.msrb.mxu1 %vm60_vm0, %v2325_v29  ;;  %1472 = vmatpush.xpose.msk.msrb.mxu3 %vm60_vm0, %v2325_v29 }
  0x7e   :  { %1411 = vmatpush.xpose.msk.msrb.mxu0 %vm60_vm0, %v2338_v30  ;;  %1455 = vmatpush.xpose.msk.msrb.mxu2 %vm60_vm0, %v2338_v30 }
  0x7f   :  { %1429 = vmatpush.xpose.msk.msrb.mxu1 %vm60_vm0, %v2343_v31  ;;  %1473 = vmatpush.xpose.msk.msrb.mxu3 %vm60_vm0, %v2343_v31  ;;  %v222_v52 = vpop.permute.xlu1 %221 }
  0x81   :  { %1412 = vmatmul.msk.f32.vlgmr.msrb.gmra.mxu0 %vm60_vm0, %v1392_v39  ;;  %1456 = vmatmul.msk.f32.vlgmr.msrb.gmra.mxu2 %vm60_vm0, %v1436_v40 }
  0x82   :  { %1484 = vmatpush.xpose.msk.msra.mxu0 %vm60_vm0, %v2068_v0  ;;  %1528 = vmatpush.xpose.msk.msra.mxu2 %vm60_vm0, %v2068_v0  ;;  %v53_v53 = vpop.permute.xlu0 %52 }
  0x83   :  { %1502 = vmatpush.xpose.msk.msra.mxu1 %vm60_vm0, %v2073_v1  ;;  %1546 = vmatpush.xpose.msk.msra.mxu3 %vm60_vm0, %v2073_v1 }
  0x84   :  { %1430 = vmatmul.msk.f32.vlgmr.msrb.gmra.mxu1 %vm60_vm0, %v1392_v39  ;;  %1474 = vmatmul.msk.f32.vlgmr.msrb.gmra.mxu3 %vm60_vm0, %v1436_v40 }
  0x86   :  { %1485 = vmatpush.xpose.msk.msra.mxu0 %vm60_vm0, %v2086_v2  ;;  %1529 = vmatpush.xpose.msk.msra.mxu2 %vm60_vm0, %v2086_v2 }
  0x87   :  { %1503 = vmatpush.xpose.msk.msra.mxu1 %vm60_vm0, %v2091_v3  ;;  %1547 = vmatpush.xpose.msk.msra.mxu3 %vm60_vm0, %v2091_v3  ;;  %v227_v37 = vpop.permute.xlu1 %226 }
  0x89   :  { %1413 = vmatmul.msk.f32.gmra.mxu0 %vm60_vm0, %v1393_v45  ;;  %1457 = vmatmul.msk.f32.gmra.mxu2 %vm60_vm0, %v1437_v46 }
  0x8a   :  { %1486 = vmatpush.xpose.msk.msra.mxu0 %vm60_vm0, %v2104_v4  ;;  %1530 = vmatpush.xpose.msk.msra.mxu2 %vm60_vm0, %v2104_v4  ;;  %v58_v38 = vpop.permute.xlu0 %57 }
  0x8b   :  { %1504 = vmatpush.xpose.msk.msra.mxu1 %vm60_vm0, %v2109_v5  ;;  %1548 = vmatpush.xpose.msk.msra.mxu3 %vm60_vm0, %v2109_v5 }
  0x8c   :  { %1431 = vmatmul.msk.f32.gmra.mxu1 %vm60_vm0, %v1393_v45  ;;  %1475 = vmatmul.msk.f32.gmra.mxu3 %vm60_vm0, %v1437_v46  ;;  %v295_v45 = vpop.permute.xlu2 %294  ;;  %v1483_v46 = vld [vmem:[%s3859_s2 + $0x48] sm:$0x3] }
  0x8d   :  { %445 = vperm.xlu0 %2009, %v1483_v46   ;;  %v3351_v46 = vld [vmem:[%s3857_s0 + $0x48] sm:$0xff] }
  0x8e   :  { %1487 = vmatpush.xpose.msk.msra.mxu0 %vm60_vm0, %v2122_v6  ;;  %1531 = vmatpush.xpose.msk.msra.mxu2 %vm60_vm0, %v2122_v6 }
  0x8f   :  { %1505 = vmatpush.xpose.msk.msra.mxu1 %vm60_vm0, %v2127_v7  ;;  %1549 = vmatpush.xpose.msk.msra.mxu3 %vm60_vm0, %v2127_v7 }
  0x92   :  { %1488 = vmatpush.xpose.msk.msra.mxu0 %vm60_vm0, %v2140_v8  ;;  %1532 = vmatpush.xpose.msk.msra.mxu2 %vm60_vm0, %v2140_v8 }
  0x93   :  { %1506 = vmatpush.xpose.msk.msra.mxu1 %vm60_vm0, %v2145_v9  ;;  %1550 = vmatpush.xpose.msk.msra.mxu3 %vm60_vm0, %v2145_v9 }
  0x96   :  { %1489 = vmatpush.xpose.msk.msra.mxu0 %vm60_vm0, %v2158_v10  ;;  %1533 = vmatpush.xpose.msk.msra.mxu2 %vm60_vm0, %v2158_v10 }
  0x97   :  { %1507 = vmatpush.xpose.msk.msra.mxu1 %vm60_vm0, %v2163_v11  ;;  %1551 = vmatpush.xpose.msk.msra.mxu3 %vm60_vm0, %v2163_v11 }
  0x9a   :  { %1490 = vmatpush.xpose.msk.msra.mxu0 %vm60_vm0, %v2176_v12  ;;  %1534 = vmatpush.xpose.msk.msra.mxu2 %vm60_vm0, %v2176_v12 }
  0x9b   :  { %1508 = vmatpush.xpose.msk.msra.mxu1 %vm60_vm0, %v2181_v13  ;;  %1552 = vmatpush.xpose.msk.msra.mxu3 %vm60_vm0, %v2181_v13 }
  0x9e   :  { %1491 = vmatpush.xpose.msk.msra.mxu0 %vm60_vm0, %v2194_v14  ;;  %1535 = vmatpush.xpose.msk.msra.mxu2 %vm60_vm0, %v2194_v14 }
  0x9f   :  { %1509 = vmatpush.xpose.msk.msra.mxu1 %vm60_vm0, %v2199_v15  ;;  %1553 = vmatpush.xpose.msk.msra.mxu3 %vm60_vm0, %v2199_v15 }
  0xa2   :  { %1492 = vmatpush.xpose.msk.msra.mxu0 %vm60_vm0, %v2212_v16  ;;  %1536 = vmatpush.xpose.msk.msra.mxu2 %vm60_vm0, %v2212_v16 }
  0xa3   :  { %1510 = vmatpush.xpose.msk.msra.mxu1 %vm60_vm0, %v2217_v17  ;;  %1554 = vmatpush.xpose.msk.msra.mxu3 %vm60_vm0, %v2217_v17 }
  0xa6   :  { %1493 = vmatpush.xpose.msk.msra.mxu0 %vm60_vm0, %v2230_v18  ;;  %1537 = vmatpush.xpose.msk.msra.mxu2 %vm60_vm0, %v2230_v18 }
  0xa7   :  { %1511 = vmatpush.xpose.msk.msra.mxu1 %vm60_vm0, %v2235_v19  ;;  %1555 = vmatpush.xpose.msk.msra.mxu3 %vm60_vm0, %v2235_v19 }
  0xaa   :  { %1494 = vmatpush.xpose.msk.msra.mxu0 %vm60_vm0, %v2248_v20  ;;  %1538 = vmatpush.xpose.msk.msra.mxu2 %vm60_vm0, %v2248_v20 }
  0xab   :  { %1512 = vmatpush.xpose.msk.msra.mxu1 %vm60_vm0, %v2253_v21  ;;  %1556 = vmatpush.xpose.msk.msra.mxu3 %vm60_vm0, %v2253_v21 }
  0xae   :  { %1495 = vmatpush.xpose.msk.msra.mxu0 %vm60_vm0, %v2266_v22  ;;  %1539 = vmatpush.xpose.msk.msra.mxu2 %vm60_vm0, %v2266_v22 }
  0xaf   :  { %1513 = vmatpush.xpose.msk.msra.mxu1 %vm60_vm0, %v2271_v23  ;;  %1557 = vmatpush.xpose.msk.msra.mxu3 %vm60_vm0, %v2271_v23 }
  0xb2   :  { %1496 = vmatpush.xpose.msk.msra.mxu0 %vm60_vm0, %v2284_v24  ;;  %1540 = vmatpush.xpose.msk.msra.mxu2 %vm60_vm0, %v2284_v24 }
  0xb3   :  { %1514 = vmatpush.xpose.msk.msra.mxu1 %vm60_vm0, %v2289_v25  ;;  %1558 = vmatpush.xpose.msk.msra.mxu3 %vm60_vm0, %v2289_v25 }
  0xb6   :  { %1497 = vmatpush.xpose.msk.msra.mxu0 %vm60_vm0, %v2302_v26  ;;  %1541 = vmatpush.xpose.msk.msra.mxu2 %vm60_vm0, %v2302_v26 }
  0xb7   :  { %1515 = vmatpush.xpose.msk.msra.mxu1 %vm60_vm0, %v2307_v27  ;;  %1559 = vmatpush.xpose.msk.msra.mxu3 %vm60_vm0, %v2307_v27 }
  0xba   :  { %1498 = vmatpush.xpose.msk.msra.mxu0 %vm60_vm0, %v2320_v28  ;;  %1542 = vmatpush.xpose.msk.msra.mxu2 %vm60_vm0, %v2320_v28 }
  0xbb   :  { %1516 = vmatpush.xpose.msk.msra.mxu1 %vm60_vm0, %v2325_v29  ;;  %1560 = vmatpush.xpose.msk.msra.mxu3 %vm60_vm0, %v2325_v29 }
  0xbe   :  { %1499 = vmatpush.xpose.msk.msra.mxu0 %vm60_vm0, %v2338_v30  ;;  %1543 = vmatpush.xpose.msk.msra.mxu2 %vm60_vm0, %v2338_v30  ;;  %v180_v50 = vpop.f32.mrf.mxu0 }
  0xbf   :  { %1517 = vmatpush.xpose.msk.msra.mxu1 %vm60_vm0, %v2343_v31  ;;  %1561 = vmatpush.xpose.msk.msra.mxu3 %vm60_vm0, %v2343_v31  ;;  %v181_v54 = vadd.f32 %v180_v50, %v53_v53 }
  0xc1   :  { %1500 = vmatmul.msk.f32.vlgmr.msra.gmra.mxu0 %vm60_vm0, %v1480_v47  ;;  %1544 = vmatmul.msk.f32.vlgmr.msra.gmra.mxu2 %vm60_vm0, %v1524_v48  ;;  %v203_v51 = vpop.f32.mrf.mxu1  ;;  %209 = vst [vmem:[%s3860_s3] sm:$0xff] %v181_v54 }
  0xc2   :  { %1572 = vmatpush.xpose.msk.msrb.mxu0 %vm60_vm0, %v2068_v0  ;;  %1616 = vmatpush.xpose.msk.msrb.mxu2 %vm60_vm0, %v2068_v0  ;;  %v204_v55 = vadd.f32 %v203_v51, %v53_v53 }
  0xc3   :  { %1590 = vmatpush.xpose.msk.msrb.mxu1 %vm60_vm0, %v2073_v1  ;;  %1634 = vmatpush.xpose.msk.msrb.mxu3 %vm60_vm0, %v2073_v1 }
  0xc4   :  { %1518 = vmatmul.msk.f32.vlgmr.msra.gmra.mxu1 %vm60_vm0, %v1480_v47  ;;  %1562 = vmatmul.msk.f32.vlgmr.msra.gmra.mxu3 %vm60_vm0, %v1524_v48  ;;  %v252_v56 = vpop.f32.mrf.mxu2  ;;  %210 = vst [vmem:[%s3860_s3 + $0x8] sm:$0xff] %v204_v55  ;;  %v368_v48 = vpop.permute.xlu0 %367 }
  0xc5   :  { %v253_v58 = vadd.f32 %v252_v56, %v222_v52  ;;  %v1570_v56 = vld [vmem:[%s3859_s2 + $0x60] sm:$0xff] }
  0xc6   :  { %1573 = vmatpush.xpose.msk.msrb.mxu0 %vm60_vm0, %v2086_v2  ;;  %1617 = vmatpush.xpose.msk.msrb.mxu2 %vm60_vm0, %v2086_v2  ;;  %v183_v35 = vpop.f32.mrf.mxu0 }
  0xc7   :  { %1591 = vmatpush.xpose.msk.msrb.mxu1 %vm60_vm0, %v2091_v3  ;;  %1635 = vmatpush.xpose.msk.msrb.mxu3 %vm60_vm0, %v2091_v3  ;;  %v275_v57 = vpop.f32.mrf.mxu3  ;;  %1388 = vst [vmem:[%s3860_s3 + $0x20] sm:$0xff] %v253_v58  ;;  %v184_v39 = vadd.f32 %v183_v35, %v58_v38  ;;  %v1747_v35 = vld [vmem:[%s3859_s2 + $0xa8] sm:$0x3] }
  0xc8   :  { %v276_v59 = vadd.f32 %v275_v57, %v222_v52  ;;  %586 = vperm.xlu0 %2009, %v1570_v56   ;;  %v1527_v57 = vld [vmem:[%s3859_s2 + $0x58] sm:$0x3] }
  0xc9   :  { %1501 = vmatmul.msk.f32.gmra.mxu0 %vm60_vm0, %v1481_v63  ;;  %1545 = vmatmul.msk.f32.gmra.mxu2 %vm60_vm0, %v1525_v32  ;;  %v206_v36 = vpop.f32.mrf.mxu1  ;;  %211 = vst [vmem:[%s3860_s3 + $0x10] sm:$0x3] %v184_v39  ;;  %v3306_v39 = vld [vmem:[%s3857_s0 + $0xd8] sm:$0xff] }
  0xca   :  { %1574 = vmatpush.xpose.msk.msrb.mxu0 %vm60_vm0, %v2104_v4  ;;  %1618 = vmatpush.xpose.msk.msrb.mxu2 %vm60_vm0, %v2104_v4  ;;  %1389 = vst [vmem:[%s3860_s3 + $0x28] sm:$0xff] %v276_v59  ;;  %v207_v40 = vadd.f32 %v206_v36, %v58_v38  ;;  %v1744_v36 = vld [vmem:[%s3858_s1 + $0xa0] sm:$0xff]  ;;  %v3299_v38 = vld [vmem:[%s3857_s0 + $0x58] sm:$0xff] }
  0xcb   :  { %1592 = vmatpush.xpose.msk.msrb.mxu1 %vm60_vm0, %v2109_v5  ;;  %1636 = vmatpush.xpose.msk.msrb.mxu3 %vm60_vm0, %v2109_v5 }
  0xcc   :  { %1519 = vmatmul.msk.f32.gmra.mxu1 %vm60_vm0, %v1481_v63  ;;  %1563 = vmatmul.msk.f32.gmra.mxu3 %vm60_vm0, %v1525_v32  ;;  %v255_v41 = vpop.f32.mrf.mxu2  ;;  %212 = vst [vmem:[%s3860_s3 + $0x18] sm:$0x3] %v207_v40  ;;  %v3319_v40 = vld [vmem:[%s3857_s0 + $0x50] sm:$0xff] }
  0xcd   :  { %v256_v43 = vadd.f32 %v255_v41, %v227_v37  ;;  %518 = vperm.xlu2 %2011, %v1527_v57   ;;  %v3326_v41 = vld [vmem:[%s3857_s0 + $0xd0] sm:$0xff] }
  0xce   :  { %1575 = vmatpush.xpose.msk.msrb.mxu0 %vm60_vm0, %v2122_v6  ;;  %1619 = vmatpush.xpose.msk.msrb.mxu2 %vm60_vm0, %v2122_v6 }
  0xcf   :  { %1593 = vmatpush.xpose.msk.msrb.mxu1 %vm60_vm0, %v2127_v7  ;;  %1637 = vmatpush.xpose.msk.msrb.mxu3 %vm60_vm0, %v2127_v7  ;;  %v278_v42 = vpop.f32.mrf.mxu3  ;;  %1390 = vst [vmem:[%s3860_s3 + $0x30] sm:$0x3] %v256_v43  ;;  %v1834_v43 = vld [vmem:[%s3859_s2 + $0xc0] sm:$0xff] }
  0xd0   :  { %v279_v44 = vadd.f32 %v278_v42, %v227_v37  ;;  %v1788_v37 = vld [vmem:[%s3858_s1 + $0xb0] sm:$0xff]  ;;  %v1835_v42 = vld [vmem:[%s3859_s2 + $0xc8] sm:$0x3] }
  0xd2   :  { %1576 = vmatpush.xpose.msk.msrb.mxu0 %vm60_vm0, %v2140_v8  ;;  %1620 = vmatpush.xpose.msk.msrb.mxu2 %vm60_vm0, %v2140_v8  ;;  %1391 = vst [vmem:[%s3860_s3 + $0x38] sm:$0x3] %v279_v44  ;;  %v1745_v44 = vld [vmem:[%s3858_s1 + $0xa8] sm:$0x3] }
  0xd3   :  { %1594 = vmatpush.xpose.msk.msrb.mxu1 %vm60_vm0, %v2145_v9  ;;  %1638 = vmatpush.xpose.msk.msrb.mxu3 %vm60_vm0, %v2145_v9 }
  0xd6   :  { %1577 = vmatpush.xpose.msk.msrb.mxu0 %vm60_vm0, %v2158_v10  ;;  %1621 = vmatpush.xpose.msk.msrb.mxu2 %vm60_vm0, %v2158_v10 }
  0xd7   :  { %1595 = vmatpush.xpose.msk.msrb.mxu1 %vm60_vm0, %v2163_v11  ;;  %1639 = vmatpush.xpose.msk.msrb.mxu3 %vm60_vm0, %v2163_v11 }
  0xda   :  { %1578 = vmatpush.xpose.msk.msrb.mxu0 %vm60_vm0, %v2176_v12  ;;  %1622 = vmatpush.xpose.msk.msrb.mxu2 %vm60_vm0, %v2176_v12 }
  0xdb   :  { %1596 = vmatpush.xpose.msk.msrb.mxu1 %vm60_vm0, %v2181_v13  ;;  %1640 = vmatpush.xpose.msk.msrb.mxu3 %vm60_vm0, %v2181_v13 }
  0xde   :  { %1579 = vmatpush.xpose.msk.msrb.mxu0 %vm60_vm0, %v2194_v14  ;;  %1623 = vmatpush.xpose.msk.msrb.mxu2 %vm60_vm0, %v2194_v14 }
  0xdf   :  { %1597 = vmatpush.xpose.msk.msrb.mxu1 %vm60_vm0, %v2199_v15  ;;  %1641 = vmatpush.xpose.msk.msrb.mxu3 %vm60_vm0, %v2199_v15 }
  0xe2   :  { %1580 = vmatpush.xpose.msk.msrb.mxu0 %vm60_vm0, %v2212_v16  ;;  %1624 = vmatpush.xpose.msk.msrb.mxu2 %vm60_vm0, %v2212_v16 }
  0xe3   :  { %1598 = vmatpush.xpose.msk.msrb.mxu1 %vm60_vm0, %v2217_v17  ;;  %1642 = vmatpush.xpose.msk.msrb.mxu3 %vm60_vm0, %v2217_v17 }
  0xe6   :  { %1581 = vmatpush.xpose.msk.msrb.mxu0 %vm60_vm0, %v2230_v18  ;;  %1625 = vmatpush.xpose.msk.msrb.mxu2 %vm60_vm0, %v2230_v18 }
  0xe7   :  { %1599 = vmatpush.xpose.msk.msrb.mxu1 %vm60_vm0, %v2235_v19  ;;  %1643 = vmatpush.xpose.msk.msrb.mxu3 %vm60_vm0, %v2235_v19 }
  0xea   :  { %1582 = vmatpush.xpose.msk.msrb.mxu0 %vm60_vm0, %v2248_v20  ;;  %1626 = vmatpush.xpose.msk.msrb.mxu2 %vm60_vm0, %v2248_v20 }
  0xeb   :  { %1600 = vmatpush.xpose.msk.msrb.mxu1 %vm60_vm0, %v2253_v21  ;;  %1644 = vmatpush.xpose.msk.msrb.mxu3 %vm60_vm0, %v2253_v21 }
  0xee   :  { %1583 = vmatpush.xpose.msk.msrb.mxu0 %vm60_vm0, %v2266_v22  ;;  %1627 = vmatpush.xpose.msk.msrb.mxu2 %vm60_vm0, %v2266_v22 }
  0xef   :  { %1601 = vmatpush.xpose.msk.msrb.mxu1 %vm60_vm0, %v2271_v23  ;;  %1645 = vmatpush.xpose.msk.msrb.mxu3 %vm60_vm0, %v2271_v23 }
  0xf2   :  { %1584 = vmatpush.xpose.msk.msrb.mxu0 %vm60_vm0, %v2284_v24  ;;  %1628 = vmatpush.xpose.msk.msrb.mxu2 %vm60_vm0, %v2284_v24 }
  0xf3   :  { %1602 = vmatpush.xpose.msk.msrb.mxu1 %vm60_vm0, %v2289_v25  ;;  %1646 = vmatpush.xpose.msk.msrb.mxu3 %vm60_vm0, %v2289_v25 }
  0xf6   :  { %1585 = vmatpush.xpose.msk.msrb.mxu0 %vm60_vm0, %v2302_v26  ;;  %1629 = vmatpush.xpose.msk.msrb.mxu2 %vm60_vm0, %v2302_v26 }
  0xf7   :  { %1603 = vmatpush.xpose.msk.msrb.mxu1 %vm60_vm0, %v2307_v27  ;;  %1647 = vmatpush.xpose.msk.msrb.mxu3 %vm60_vm0, %v2307_v27 }
  0xfa   :  { %1586 = vmatpush.xpose.msk.msrb.mxu0 %vm60_vm0, %v2320_v28  ;;  %1630 = vmatpush.xpose.msk.msrb.mxu2 %vm60_vm0, %v2320_v28 }
  0xfb   :  { %1604 = vmatpush.xpose.msk.msrb.mxu1 %vm60_vm0, %v2325_v29  ;;  %1648 = vmatpush.xpose.msk.msrb.mxu3 %vm60_vm0, %v2325_v29 }
  0xfe   :  { %1587 = vmatpush.xpose.msk.msrb.mxu0 %vm60_vm0, %v2338_v30  ;;  %1631 = vmatpush.xpose.msk.msrb.mxu2 %vm60_vm0, %v2338_v30  ;;  %v325_v47 = vpop.f32.mrf.mxu0 }
  0xff   :  { %1605 = vmatpush.xpose.msk.msrb.mxu1 %vm60_vm0, %v2343_v31  ;;  %1649 = vmatpush.xpose.msk.msrb.mxu3 %vm60_vm0, %v2343_v31  ;;  %v326_v49 = vadd.f32 %v325_v47, %v295_v45  ;;  %v3358_v47 = vld [vmem:[%s3857_s0 + $0xc8] sm:$0xff]  ;;  %v446_v56 = vpop.permute.xlu0 %445 }
 0x101   :  { %1588 = vmatmul.msk.f32.vlgmr.msrb.gmra.mxu0 %vm60_vm0, %v1568_v33  ;;  %1632 = vmatmul.msk.f32.vlgmr.msrb.gmra.mxu2 %vm60_vm0, %v1612_v34  ;;  %v348_v50 = vpop.f32.mrf.mxu1  ;;  %1432 = vst [vmem:[%s3860_s3 + $0x40] sm:$0xff] %v326_v49  ;;  %v3378_v49 = vld [vmem:[%s3857_s0 + $0xc0] sm:$0xff] }
 0x102   :  { %1660 = vmatpush.xpose.msk.msra.mxu0 %vm60_vm0, %v2068_v0  ;;  %1704 = vmatpush.xpose.msk.msra.mxu2 %vm60_vm0, %v2068_v0  ;;  %v349_v51 = vadd.f32 %v348_v50, %v295_v45  ;;  %v1789_v45 = vld [vmem:[%s3858_s1 + $0xb8] sm:$0x3]  ;;  %v1922_v50 = vld [vmem:[%s3859_s2 + $0xe0] sm:$0xff] }
 0x103   :  { %1678 = vmatpush.xpose.msk.msra.mxu1 %vm60_vm0, %v2073_v1  ;;  %1722 = vmatpush.xpose.msk.msra.mxu3 %vm60_vm0, %v2073_v1 }
 0x104   :  { %1606 = vmatmul.msk.f32.vlgmr.msrb.gmra.mxu1 %vm60_vm0, %v1568_v33  ;;  %1650 = vmatmul.msk.f32.vlgmr.msrb.gmra.mxu3 %vm60_vm0, %v1612_v34  ;;  %v398_v52 = vpop.f32.mrf.mxu2  ;;  %1433 = vst [vmem:[%s3860_s3 + $0x48] sm:$0xff] %v349_v51  ;;  %v3274_v33 = vld [vmem:[%s3857_s0 + $0xe0] sm:$0xff]  ;;  %v1790_v34 = vld [vmem:[%s3859_s2 + $0xb0] sm:$0xff]  ;;  %v1879_v51 = vld [vmem:[%s3859_s2 + $0xd8] sm:$0x3] }
 0x105   :  { %v399_v54 = vadd.f32 %v398_v52, %v368_v48 }
 0x106   :  { %1661 = vmatpush.xpose.msk.msra.mxu0 %vm60_vm0, %v2086_v2  ;;  %1705 = vmatpush.xpose.msk.msra.mxu2 %vm60_vm0, %v2086_v2 }
 0x107   :  { %1679 = vmatpush.xpose.msk.msra.mxu1 %vm60_vm0, %v2091_v3  ;;  %1723 = vmatpush.xpose.msk.msra.mxu3 %vm60_vm0, %v2091_v3  ;;  %v421_v53 = vpop.f32.mrf.mxu3  ;;  %1476 = vst [vmem:[%s3860_s3 + $0x60] sm:$0xff] %v399_v54  ;;  %v3395_v54 = vld [vmem:[%s3857_s0 + $0x38] sm:$0xff] }
 0x108   :  { %v422_v55 = vadd.f32 %v421_v53, %v368_v48  ;;  %v3371_v48 = vld [vmem:[%s3857_s0 + $0x40] sm:$0xff] }
 0x10a   :  { %1662 = vmatpush.xpose.msk.msra.mxu0 %vm60_vm0, %v2104_v4  ;;  %1706 = vmatpush.xpose.msk.msra.mxu2 %vm60_vm0, %v2104_v4  ;;  %1477 = vst [vmem:[%s3860_s3 + $0x68] sm:$0xff] %v422_v55  ;;  %v3402_v55 = vld [vmem:[%s3857_s0 + $0xb8] sm:$0xff] }
 0x10b   :  { %1680 = vmatpush.xpose.msk.msra.mxu1 %vm60_vm0, %v2109_v5  ;;  %1724 = vmatpush.xpose.msk.msra.mxu3 %vm60_vm0, %v2109_v5 }
 0x10e   :  { %1663 = vmatpush.xpose.msk.msra.mxu0 %vm60_vm0, %v2122_v6  ;;  %1707 = vmatpush.xpose.msk.msra.mxu2 %vm60_vm0, %v2122_v6 }
 0x10f   :  { %1681 = vmatpush.xpose.msk.msra.mxu1 %vm60_vm0, %v2127_v7  ;;  %1725 = vmatpush.xpose.msk.msra.mxu3 %vm60_vm0, %v2127_v7 }
 0x112   :  { %1664 = vmatpush.xpose.msk.msra.mxu0 %vm60_vm0, %v2140_v8  ;;  %1708 = vmatpush.xpose.msk.msra.mxu2 %vm60_vm0, %v2140_v8 }
 0x113   :  { %1682 = vmatpush.xpose.msk.msra.mxu1 %vm60_vm0, %v2145_v9  ;;  %1726 = vmatpush.xpose.msk.msra.mxu3 %vm60_vm0, %v2145_v9 }
 0x116   :  { %1665 = vmatpush.xpose.msk.msra.mxu0 %vm60_vm0, %v2158_v10  ;;  %1709 = vmatpush.xpose.msk.msra.mxu2 %vm60_vm0, %v2158_v10 }
 0x117   :  { %1683 = vmatpush.xpose.msk.msra.mxu1 %vm60_vm0, %v2163_v11  ;;  %1727 = vmatpush.xpose.msk.msra.mxu3 %vm60_vm0, %v2163_v11 }
 0x11a   :  { %1666 = vmatpush.xpose.msk.msra.mxu0 %vm60_vm0, %v2176_v12  ;;  %1710 = vmatpush.xpose.msk.msra.mxu2 %vm60_vm0, %v2176_v12 }
 0x11b   :  { %1684 = vmatpush.xpose.msk.msra.mxu1 %vm60_vm0, %v2181_v13  ;;  %1728 = vmatpush.xpose.msk.msra.mxu3 %vm60_vm0, %v2181_v13 }
 0x11e   :  { %1667 = vmatpush.xpose.msk.msra.mxu0 %vm60_vm0, %v2194_v14  ;;  %1711 = vmatpush.xpose.msk.msra.mxu2 %vm60_vm0, %v2194_v14 }
 0x11f   :  { %1685 = vmatpush.xpose.msk.msra.mxu1 %vm60_vm0, %v2199_v15  ;;  %1729 = vmatpush.xpose.msk.msra.mxu3 %vm60_vm0, %v2199_v15 }
 0x122   :  { %1668 = vmatpush.xpose.msk.msra.mxu0 %vm60_vm0, %v2212_v16  ;;  %1712 = vmatpush.xpose.msk.msra.mxu2 %vm60_vm0, %v2212_v16 }
 0x123   :  { %1686 = vmatpush.xpose.msk.msra.mxu1 %vm60_vm0, %v2217_v17  ;;  %1730 = vmatpush.xpose.msk.msra.mxu3 %vm60_vm0, %v2217_v17 }
 0x126   :  { %1669 = vmatpush.xpose.msk.msra.mxu0 %vm60_vm0, %v2230_v18  ;;  %1713 = vmatpush.xpose.msk.msra.mxu2 %vm60_vm0, %v2230_v18 }
 0x127   :  { %1687 = vmatpush.xpose.msk.msra.mxu1 %vm60_vm0, %v2235_v19  ;;  %1731 = vmatpush.xpose.msk.msra.mxu3 %vm60_vm0, %v2235_v19 }
 0x12a   :  { %1670 = vmatpush.xpose.msk.msra.mxu0 %vm60_vm0, %v2248_v20  ;;  %1714 = vmatpush.xpose.msk.msra.mxu2 %vm60_vm0, %v2248_v20 }
 0x12b   :  { %1688 = vmatpush.xpose.msk.msra.mxu1 %vm60_vm0, %v2253_v21  ;;  %1732 = vmatpush.xpose.msk.msra.mxu3 %vm60_vm0, %v2253_v21 }
 0x12e   :  { %1671 = vmatpush.xpose.msk.msra.mxu0 %vm60_vm0, %v2266_v22  ;;  %1715 = vmatpush.xpose.msk.msra.mxu2 %vm60_vm0, %v2266_v22 }
 0x12f   :  { %1689 = vmatpush.xpose.msk.msra.mxu1 %vm60_vm0, %v2271_v23  ;;  %1733 = vmatpush.xpose.msk.msra.mxu3 %vm60_vm0, %v2271_v23 }
 0x132   :  { %1672 = vmatpush.xpose.msk.msra.mxu0 %vm60_vm0, %v2284_v24  ;;  %1716 = vmatpush.xpose.msk.msra.mxu2 %vm60_vm0, %v2284_v24 }
 0x133   :  { %1690 = vmatpush.xpose.msk.msra.mxu1 %vm60_vm0, %v2289_v25  ;;  %1734 = vmatpush.xpose.msk.msra.mxu3 %vm60_vm0, %v2289_v25 }
 0x136   :  { %1673 = vmatpush.xpose.msk.msra.mxu0 %vm60_vm0, %v2302_v26  ;;  %1717 = vmatpush.xpose.msk.msra.mxu2 %vm60_vm0, %v2302_v26 }
 0x137   :  { %1691 = vmatpush.xpose.msk.msra.mxu1 %vm60_vm0, %v2307_v27  ;;  %1735 = vmatpush.xpose.msk.msra.mxu3 %vm60_vm0, %v2307_v27 }
 0x13a   :  { %1674 = vmatpush.xpose.msk.msra.mxu0 %vm60_vm0, %v2320_v28  ;;  %1718 = vmatpush.xpose.msk.msra.mxu2 %vm60_vm0, %v2320_v28 }
 0x13b   :  { %1692 = vmatpush.xpose.msk.msra.mxu1 %vm60_vm0, %v2325_v29  ;;  %1736 = vmatpush.xpose.msk.msra.mxu3 %vm60_vm0, %v2325_v29 }
 0x13e   :  { %1675 = vmatpush.xpose.msk.msra.mxu0 %vm60_vm0, %v2338_v30  ;;  %1719 = vmatpush.xpose.msk.msra.mxu2 %vm60_vm0, %v2338_v30 }
 0x13f   :  { %1693 = vmatpush.xpose.msk.msra.mxu1 %vm60_vm0, %v2343_v31  ;;  %1737 = vmatpush.xpose.msk.msra.mxu3 %vm60_vm0, %v2343_v31 }
 0x142   :  { %1748 = vmatpush.xpose.msk.msrb.mxu0 %vm60_vm0, %v2068_v0  ;;  %1792 = vmatpush.xpose.msk.msrb.mxu2 %vm60_vm0, %v2068_v0  ;;  %v1614_v0 = vld [vmem:[%s3859_s2 + $0x70] sm:$0xff] }
 0x143   :  { %1766 = vmatpush.xpose.msk.msrb.mxu1 %vm60_vm0, %v2073_v1  ;;  %1810 = vmatpush.xpose.msk.msrb.mxu3 %vm60_vm0, %v2073_v1  ;;  %v1569_v1 = vld [vmem:[%s3858_s1 + $0x68] sm:$0x3] }
 0x144   :  { %659 = vperm.xlu2 %2011, %v1614_v0   ;;  %1589 = vmatmul.msk.f32.gmra.mxu0 %vm60_vm0, %v1569_v1 }
 0x145   :  { %1607 = vmatmul.msk.f32.gmra.mxu1 %vm60_vm0, %v1569_v1 }
 0x146   :  { %1749 = vmatpush.xpose.msk.msrb.mxu0 %vm60_vm0, %v2086_v2  ;;  %1793 = vmatpush.xpose.msk.msrb.mxu2 %vm60_vm0, %v2086_v2  ;;  %v1613_v2 = vld [vmem:[%s3858_s1 + $0x78] sm:$0x3] }
 0x147   :  { %1767 = vmatpush.xpose.msk.msrb.mxu1 %vm60_vm0, %v2091_v3  ;;  %1811 = vmatpush.xpose.msk.msrb.mxu3 %vm60_vm0, %v2091_v3  ;;  %v1656_v3 = vld [vmem:[%s3858_s1 + $0x80] sm:$0xff] }
 0x148   :  { %1633 = vmatmul.msk.f32.gmra.mxu2 %vm60_vm0, %v1613_v2  ;;  %1651 = vmatmul.msk.f32.gmra.mxu3 %vm60_vm0, %v1613_v2 }
 0x14a   :  { %1750 = vmatpush.xpose.msk.msrb.mxu0 %vm60_vm0, %v2104_v4  ;;  %1794 = vmatpush.xpose.msk.msrb.mxu2 %vm60_vm0, %v2104_v4  ;;  %v1700_v4 = vld [vmem:[%s3858_s1 + $0x90] sm:$0xff] }
 0x14b   :  { %1768 = vmatpush.xpose.msk.msrb.mxu1 %vm60_vm0, %v2109_v5  ;;  %1812 = vmatpush.xpose.msk.msrb.mxu3 %vm60_vm0, %v2109_v5  ;;  %v300_v5 = vpop.permute.xlu2 %299 }
 0x14c   :  { %1676 = vmatmul.msk.f32.vlgmr.msra.gmra.mxu0 %vm60_vm0, %v1656_v3 }
 0x14d   :  { %1694 = vmatmul.msk.f32.vlgmr.msra.gmra.mxu1 %vm60_vm0, %v1656_v3 }
 0x14e   :  { %1751 = vmatpush.xpose.msk.msrb.mxu0 %vm60_vm0, %v2122_v6  ;;  %1795 = vmatpush.xpose.msk.msrb.mxu2 %vm60_vm0, %v2122_v6  ;;  %v328_v6 = vpop.f32.mrf.mxu0 }
 0x14f   :  { %1769 = vmatpush.xpose.msk.msrb.mxu1 %vm60_vm0, %v2127_v7  ;;  %1813 = vmatpush.xpose.msk.msrb.mxu3 %vm60_vm0, %v2127_v7  ;;  %v373_v7 = vpop.permute.xlu1 %372 }
 0x150   :  { %1720 = vmatmul.msk.f32.vlgmr.msra.gmra.mxu2 %vm60_vm0, %v1700_v4  ;;  %1738 = vmatmul.msk.f32.vlgmr.msra.gmra.mxu3 %vm60_vm0, %v1700_v4 }
 0x152   :  { %1752 = vmatpush.xpose.msk.msrb.mxu0 %vm60_vm0, %v2140_v8  ;;  %1796 = vmatpush.xpose.msk.msrb.mxu2 %vm60_vm0, %v2140_v8  ;;  %v329_v8 = vadd.f32 %v328_v6, %v300_v5  ;;  %v1659_v6 = vld [vmem:[%s3859_s2 + $0x88] sm:$0x3] }
 0x153   :  { %1770 = vmatpush.xpose.msk.msrb.mxu1 %vm60_vm0, %v2145_v9  ;;  %1814 = vmatpush.xpose.msk.msrb.mxu3 %vm60_vm0, %v2145_v9  ;;  %v351_v9 = vpop.f32.mrf.mxu1 }
 0x154   :  { %1434 = vst [vmem:[%s3860_s3 + $0x50] sm:$0x3] %v329_v8  ;;  %v3422_v8 = vld [vmem:[%s3857_s0 + $0x30] sm:$0xff]  ;;  %737 = vperm.xlu2 %2011, %v1659_v6  }
 0x156   :  { %1753 = vmatpush.xpose.msk.msrb.mxu0 %vm60_vm0, %v2158_v10  ;;  %1797 = vmatpush.xpose.msk.msrb.mxu2 %vm60_vm0, %v2158_v10  ;;  %v352_v10 = vadd.f32 %v351_v9, %v300_v5  ;;  %v471_v58 = vpop.f32.mrf.mxu0  ;;  %v3429_v9 = vld [vmem:[%s3857_s0 + $0xb0] sm:$0xff] }
 0x157   :  { %1771 = vmatpush.xpose.msk.msrb.mxu1 %vm60_vm0, %v2163_v11  ;;  %1815 = vmatpush.xpose.msk.msrb.mxu3 %vm60_vm0, %v2163_v11  ;;  %v401_v11 = vpop.f32.mrf.mxu2 }
 0x158   :  { %1435 = vst [vmem:[%s3860_s3 + $0x58] sm:$0x3] %v352_v10  ;;  %v1966_v10 = vld [vmem:[%s3859_s2 + $0xf0] sm:$0xff] }
 0x15a   :  { %1754 = vmatpush.xpose.msk.msrb.mxu0 %vm60_vm0, %v2176_v12  ;;  %1798 = vmatpush.xpose.msk.msrb.mxu2 %vm60_vm0, %v2176_v12  ;;  %v424_v12 = vpop.f32.mrf.mxu3 }
 0x15b   :  { %1772 = vmatpush.xpose.msk.msrb.mxu1 %vm60_vm0, %v2181_v13  ;;  %1816 = vmatpush.xpose.msk.msrb.mxu3 %vm60_vm0, %v2181_v13  ;;  %v402_v13 = vadd.f32 %v401_v11, %v373_v7  ;;  %v494_v59 = vpop.f32.mrf.mxu1 }
 0x15d   :  { %1478 = vst [vmem:[%s3860_s3 + $0x70] sm:$0x3] %v402_v13  ;;  %v3452_v13 = vld [vmem:[%s3857_s0 + $0x28] sm:$0xff] }
 0x15e   :  { %1755 = vmatpush.xpose.msk.msrb.mxu0 %vm60_vm0, %v2194_v14  ;;  %1799 = vmatpush.xpose.msk.msrb.mxu2 %vm60_vm0, %v2194_v14  ;;  %v425_v14 = vadd.f32 %v424_v12, %v373_v7  ;;  %v474_v53 = vpop.f32.mrf.mxu0  ;;  %v1967_v7 = vld [vmem:[%s3859_s2 + $0xf8] sm:$0x3] }
 0x15f   :  { %1773 = vmatpush.xpose.msk.msrb.mxu1 %vm60_vm0, %v2199_v15  ;;  %1817 = vmatpush.xpose.msk.msrb.mxu3 %vm60_vm0, %v2199_v15  ;;  %v441_v15 = vpop.permute.xlu2 %440  ;;  %v544_v61 = vpop.f32.mrf.mxu2  ;;  %v475_v0 = vadd.f32 %v474_v53, %v446_v56 }
 0x160   :  { %1479 = vst [vmem:[%s3860_s3 + $0x78] sm:$0x3] %v425_v14  ;;  %v495_v60 = vadd.f32 %v494_v59, %v441_v15  ;;  %v3459_v14 = vld [vmem:[%s3857_s0 + $0xa8] sm:$0xff] }
 0x161   :  { %1522 = vst [vmem:[%s3860_s3 + $0x90] sm:$0x3] %v475_v0  ;;  %v1921_v0 = vld [vmem:[%s3858_s1 + $0xe8] sm:$0x3] }
 0x162   :  { %1756 = vmatpush.xpose.msk.msrb.mxu0 %vm60_vm0, %v2212_v16  ;;  %1800 = vmatpush.xpose.msk.msrb.mxu2 %vm60_vm0, %v2212_v16  ;;  %v1571_v16 = vld [vmem:[%s3859_s2 + $0x68] sm:$0x3]  ;;  %v567_v62 = vpop.f32.mrf.mxu3  ;;  %1521 = vst [vmem:[%s3860_s3 + $0x88] sm:$0xff] %v495_v60 }
 0x163   :  { %1774 = vmatpush.xpose.msk.msrb.mxu1 %vm60_vm0, %v2217_v17  ;;  %1818 = vmatpush.xpose.msk.msrb.mxu3 %vm60_vm0, %v2217_v17  ;;  %v1615_v17 = vld [vmem:[%s3859_s2 + $0x78] sm:$0x3]  ;;  %v497_v57 = vpop.f32.mrf.mxu1 }
 0x164   :  { %591 = vperm.xlu1 %2010, %v1571_v16   ;;  %664 = vperm.xlu0 %2009, %v1615_v17   ;;  %v498_v1 = vadd.f32 %v497_v57, %v446_v56  ;;  %v1964_v56 = vld [vmem:[%s3858_s1 + $0xf0] sm:$0xff] }
 0x166   :  { %1757 = vmatpush.xpose.msk.msrb.mxu0 %vm60_vm0, %v2230_v18  ;;  %1801 = vmatpush.xpose.msk.msrb.mxu2 %vm60_vm0, %v2230_v18  ;;  %v514_v18 = vpop.permute.xlu1 %513  ;;  %1523 = vst [vmem:[%s3860_s3 + $0x98] sm:$0x3] %v498_v1  ;;  %v1965_v1 = vld [vmem:[%s3858_s1 + $0xf8] sm:$0x3] }
 0x167   :  { %1775 = vmatpush.xpose.msk.msrb.mxu1 %vm60_vm0, %v2235_v19  ;;  %1819 = vmatpush.xpose.msk.msrb.mxu3 %vm60_vm0, %v2235_v19  ;;  %v472_v19 = vadd.f32 %v471_v58, %v441_v15  ;;  %v545_v63 = vadd.f32 %v544_v61, %v514_v18  ;;  %v568_v32 = vadd.f32 %v567_v62, %v514_v18  ;;  %v519_v52 = vpop.permute.xlu2 %518  ;;  %v547_v2 = vpop.f32.mrf.mxu2  ;;  %v1746_v61 = vld [vmem:[%s3859_s2 + $0xa0] sm:$0xff] }
 0x168   :  { %v548_v4 = vadd.f32 %v547_v2, %v519_v52  ;;  %v587_v15 = vpop.permute.xlu0 %586  ;;  %v3476_v62 = vld [vmem:[%s3857_s0 + $0x20] sm:$0xff]  ;;  %878 = vperm.xlu2 %2011, %v1746_v61  }
 0x169   :  { %1520 = vst [vmem:[%s3860_s3 + $0x80] sm:$0xff] %v472_v19 }
 0x16a   :  { %1758 = vmatpush.xpose.msk.msrb.mxu0 %vm60_vm0, %v2248_v20  ;;  %1802 = vmatpush.xpose.msk.msrb.mxu2 %vm60_vm0, %v2248_v20  ;;  %1564 = vst [vmem:[%s3860_s3 + $0xa0] sm:$0xff] %v545_v63  ;;  %v1658_v20 = vld [vmem:[%s3859_s2 + $0x80] sm:$0xff]  ;;  %v570_v3 = vpop.f32.mrf.mxu3 }
 0x16b   :  { %1776 = vmatpush.xpose.msk.msrb.mxu1 %vm60_vm0, %v2253_v21  ;;  %1820 = vmatpush.xpose.msk.msrb.mxu3 %vm60_vm0, %v2253_v21  ;;  %1565 = vst [vmem:[%s3860_s3 + $0xa8] sm:$0xff] %v568_v32  ;;  %v1702_v21 = vld [vmem:[%s3859_s2 + $0x90] sm:$0xff]  ;;  %v571_v5 = vadd.f32 %v570_v3, %v519_v52  ;;  %v3483_v63 = vld [vmem:[%s3857_s0 + $0xa0] sm:$0xff]  ;;  %v3503_v32 = vld [vmem:[%s3857_s0 + $0x18] sm:$0xff] }
 0x16c   :  { %732 = vperm.xlu1 %2010, %v1658_v20   ;;  %805 = vperm.xlu0 %2009, %v1702_v21   ;;  %1566 = vst [vmem:[%s3860_s3 + $0xb0] sm:$0x3] %v548_v4  ;;  %v3510_v20 = vld [vmem:[%s3857_s0 + $0x98] sm:$0xff] }
 0x16d   :  { %1567 = vst [vmem:[%s3860_s3 + $0xb8] sm:$0x3] %v571_v5  ;;  %v1791_v21 = vld [vmem:[%s3859_s2 + $0xb8] sm:$0x3] }
 0x16e   :  { %1759 = vmatpush.xpose.msk.msrb.mxu0 %vm60_vm0, %v2266_v22  ;;  %1803 = vmatpush.xpose.msk.msrb.mxu2 %vm60_vm0, %v2266_v22  ;;  %v3200_v22 = vld [vmem:[%s3857_s0 + $0x78] sm:$0xff] }
 0x16f   :  { %1777 = vmatpush.xpose.msk.msrb.mxu1 %vm60_vm0, %v2271_v23  ;;  %1821 = vmatpush.xpose.msk.msrb.mxu3 %vm60_vm0, %v2271_v23  ;;  %v3207_v23 = vld [vmem:[%s3857_s0 + $0xf8] sm:$0xff] }
 0x170   :  { %956 = vperm.xlu2 %2011, %v1791_v21  }
 0x172   :  { %1760 = vmatpush.xpose.msk.msrb.mxu0 %vm60_vm0, %v2284_v24  ;;  %1804 = vmatpush.xpose.msk.msrb.mxu2 %vm60_vm0, %v2284_v24  ;;  %v3218_v24 = vld [vmem:[%s3857_s0 + $0x70] sm:$0xff] }
 0x173   :  { %1778 = vmatpush.xpose.msk.msrb.mxu1 %vm60_vm0, %v2289_v25  ;;  %1822 = vmatpush.xpose.msk.msrb.mxu3 %vm60_vm0, %v2289_v25  ;;  %v3225_v25 = vld [vmem:[%s3857_s0 + $0xf0] sm:$0xff] }
 0x174   :  { %883 = vperm.xlu0 %2009, %v1747_v35   ;;  %v3560_v35 = vld [vmem:[%s3857_s0] sm:$0xff] }
 0x176   :  { %1761 = vmatpush.xpose.msk.msrb.mxu0 %vm60_vm0, %v2302_v26  ;;  %1805 = vmatpush.xpose.msk.msrb.mxu2 %vm60_vm0, %v2302_v26  ;;  %v1703_v26 = vld [vmem:[%s3859_s2 + $0x98] sm:$0x3] }
 0x177   :  { %1779 = vmatpush.xpose.msk.msrb.mxu1 %vm60_vm0, %v2307_v27  ;;  %1823 = vmatpush.xpose.msk.msrb.mxu3 %vm60_vm0, %v2307_v27  ;;  %v1657_v27 = vld [vmem:[%s3858_s1 + $0x88] sm:$0x3] }
 0x178   :  { %810 = vperm.xlu1 %2010, %v1703_v26   ;;  %1677 = vmatmul.msk.f32.gmra.mxu0 %vm60_vm0, %v1657_v27  ;;  %v3524_v26 = vld [vmem:[%s3857_s0 + $0x10] sm:$0xff] }
 0x179   :  { %1695 = vmatmul.msk.f32.gmra.mxu1 %vm60_vm0, %v1657_v27  ;;  %v3531_v27 = vld [vmem:[%s3857_s0 + $0x90] sm:$0xff] }
 0x17a   :  { %1762 = vmatpush.xpose.msk.msrb.mxu0 %vm60_vm0, %v2320_v28  ;;  %1806 = vmatpush.xpose.msk.msrb.mxu2 %vm60_vm0, %v2320_v28  ;;  %v1701_v28 = vld [vmem:[%s3858_s1 + $0x98] sm:$0x3] }
 0x17b   :  { %1780 = vmatpush.xpose.msk.msrb.mxu1 %vm60_vm0, %v2325_v29  ;;  %1824 = vmatpush.xpose.msk.msrb.mxu3 %vm60_vm0, %v2325_v29  ;;  %v3248_v29 = vld [vmem:[%s3857_s0 + $0x68] sm:$0xff] }
 0x17c   :  { %1721 = vmatmul.msk.f32.gmra.mxu2 %vm60_vm0, %v1701_v28  ;;  %1739 = vmatmul.msk.f32.gmra.mxu3 %vm60_vm0, %v1701_v28  ;;  %v3542_v28 = vld [vmem:[%s3857_s0 + $0x8] sm:$0xff] }
 0x17d   :  { %1024 = vperm.xlu0 %2009, %v1834_v43   ;;  %v1878_v43 = vld [vmem:[%s3859_s2 + $0xd0] sm:$0xff] }
 0x17e   :  { %1763 = vmatpush.xpose.msk.msrb.mxu0 %vm60_vm0, %v2338_v30  ;;  %1807 = vmatpush.xpose.msk.msrb.mxu2 %vm60_vm0, %v2338_v30  ;;  %v3255_v30 = vld [vmem:[%s3857_s0 + $0xe8] sm:$0xff]  ;;  %v617_v12 = vpop.f32.mrf.mxu0 }
 0x17f   :  { %1781 = vmatpush.xpose.msk.msrb.mxu1 %vm60_vm0, %v2343_v31  ;;  %1825 = vmatpush.xpose.msk.msrb.mxu3 %vm60_vm0, %v2343_v31  ;;  %v3267_v31 = vld [vmem:[%s3857_s0 + $0x60] sm:$0xff]  ;;  %v618_v17 = vadd.f32 %v617_v12, %v587_v15 }
 0x180   :  { %951 = vperm.xlu1 %2010, %v1790_v34   ;;  %v3549_v34 = vld [vmem:[%s3857_s0 + $0x88] sm:$0xff]  ;;  %1097 = vperm.xlu2 %2011, %v1878_v43  }
 0x181   :  { %1764 = vmatmul.msk.f32.vlgmr.msrb.gmra.mxu0 %vm60_vm0, %v1744_v36  ;;  %v640_v16 = vpop.f32.mrf.mxu1  ;;  %1608 = vst [vmem:[%s3860_s3 + $0xc0] sm:$0xff] %v618_v17 }
 0x182   :  { %1836 = vmatpush.xpose.msk.msra.mxu0 %vm60_vm0, %v3200_v22  ;;  %1880 = vmatpush.xpose.msk.msra.mxu2 %vm60_vm0, %v3200_v22  ;;  %v641_v58 = vadd.f32 %v640_v16, %v587_v15 }
 0x183   :  { %1854 = vmatpush.xpose.msk.msra.mxu1 %vm60_vm0, %v3207_v23  ;;  %1898 = vmatpush.xpose.msk.msra.mxu3 %vm60_vm0, %v3207_v23 }
 0x184   :  { %1782 = vmatmul.msk.f32.vlgmr.msrb.gmra.mxu1 %vm60_vm0, %v1744_v36  ;;  %1808 = vmatmul.msk.f32.vlgmr.msrb.gmra.mxu2 %vm60_vm0, %v1788_v37  ;;  %v690_v18 = vpop.f32.mrf.mxu2  ;;  %1609 = vst [vmem:[%s3860_s3 + $0xc8] sm:$0xff] %v641_v58  ;;  %v3567_v36 = vld [vmem:[%s3857_s0 + $0x80] sm:$0xff] }
 0x185   :  { %1826 = vmatmul.msk.f32.vlgmr.msrb.gmra.mxu3 %vm60_vm0, %v1788_v37  ;;  %1102 = vperm.xlu0 %2009, %v1879_v51   ;;  %v1832_v37 = vld [vmem:[%s3858_s1 + $0xc0] sm:$0xff] }
 0x186   :  { %1837 = vmatpush.xpose.msk.msra.mxu0 %vm60_vm0, %v3218_v24  ;;  %1881 = vmatpush.xpose.msk.msra.mxu2 %vm60_vm0, %v3218_v24 }
 0x187   :  { %1855 = vmatpush.xpose.msk.msra.mxu1 %vm60_vm0, %v3225_v25  ;;  %1899 = vmatpush.xpose.msk.msra.mxu3 %vm60_vm0, %v3225_v25  ;;  %v713_v19 = vpop.f32.mrf.mxu3 }
 0x188   :  { %1029 = vperm.xlu1 %2010, %v1835_v42   ;;  %v1876_v42 = vld [vmem:[%s3858_s1 + $0xd0] sm:$0xff] }
 0x189   :  { %1765 = vmatmul.msk.f32.gmra.mxu0 %vm60_vm0, %v1745_v44 }
 0x18a   :  { %1838 = vmatpush.xpose.msk.msra.mxu0 %vm60_vm0, %v3248_v29  ;;  %1882 = vmatpush.xpose.msk.msra.mxu2 %vm60_vm0, %v3248_v29 }
 0x18b   :  { %1856 = vmatpush.xpose.msk.msra.mxu1 %vm60_vm0, %v3255_v30  ;;  %1900 = vmatpush.xpose.msk.msra.mxu3 %vm60_vm0, %v3255_v30 }
 0x18c   :  { %1783 = vmatmul.msk.f32.gmra.mxu1 %vm60_vm0, %v1745_v44  ;;  %1809 = vmatmul.msk.f32.gmra.mxu2 %vm60_vm0, %v1789_v45 }
 0x18d   :  { %1827 = vmatmul.msk.f32.gmra.mxu3 %vm60_vm0, %v1789_v45  ;;  %1243 = vperm.xlu0 %2009, %v1966_v10  }
 0x18e   :  { %1839 = vmatpush.xpose.msk.msra.mxu0 %vm60_vm0, %v3267_v31  ;;  %1883 = vmatpush.xpose.msk.msra.mxu2 %vm60_vm0, %v3267_v31 }
 0x18f   :  { %1857 = vmatpush.xpose.msk.msra.mxu1 %vm60_vm0, %v3274_v33  ;;  %1901 = vmatpush.xpose.msk.msra.mxu3 %vm60_vm0, %v3274_v33 }
 0x190   :  { %1170 = vperm.xlu1 %2010, %v1922_v50  }
 0x192   :  { %1840 = vmatpush.xpose.msk.msra.mxu0 %vm60_vm0, %v3299_v38  ;;  %1884 = vmatpush.xpose.msk.msra.mxu2 %vm60_vm0, %v3299_v38 }
 0x193   :  { %1858 = vmatpush.xpose.msk.msra.mxu1 %vm60_vm0, %v3306_v39  ;;  %1902 = vmatpush.xpose.msk.msra.mxu3 %vm60_vm0, %v3306_v39 }
 0x196   :  { %1841 = vmatpush.xpose.msk.msra.mxu0 %vm60_vm0, %v3319_v40  ;;  %1885 = vmatpush.xpose.msk.msra.mxu2 %vm60_vm0, %v3319_v40 }
 0x197   :  { %1859 = vmatpush.xpose.msk.msra.mxu1 %vm60_vm0, %v3326_v41  ;;  %1903 = vmatpush.xpose.msk.msra.mxu3 %vm60_vm0, %v3326_v41 }
 0x198   :  { %1248 = vperm.xlu1 %2010, %v1967_v7  }
 0x19a   :  { %1842 = vmatpush.xpose.msk.msra.mxu0 %vm60_vm0, %v3351_v46  ;;  %1886 = vmatpush.xpose.msk.msra.mxu2 %vm60_vm0, %v3351_v46 }
 0x19b   :  { %1860 = vmatpush.xpose.msk.msra.mxu1 %vm60_vm0, %v3358_v47  ;;  %1904 = vmatpush.xpose.msk.msra.mxu3 %vm60_vm0, %v3358_v47 }
 0x19e   :  { %1843 = vmatpush.xpose.msk.msra.mxu0 %vm60_vm0, %v3371_v48  ;;  %1887 = vmatpush.xpose.msk.msra.mxu2 %vm60_vm0, %v3371_v48  ;;  %v660_v11 = vpop.permute.xlu2 %659 }
 0x19f   :  { %1861 = vmatpush.xpose.msk.msra.mxu1 %vm60_vm0, %v3378_v49  ;;  %1905 = vmatpush.xpose.msk.msra.mxu3 %vm60_vm0, %v3378_v49  ;;  %v691_v59 = vadd.f32 %v690_v18, %v660_v11  ;;  %v714_v60 = vadd.f32 %v713_v19, %v660_v11 }
 0x1a1   :  { %1652 = vst [vmem:[%s3860_s3 + $0xe0] sm:$0xff] %v691_v59 }
 0x1a2   :  { %1844 = vmatpush.xpose.msk.msra.mxu0 %vm60_vm0, %v3395_v54  ;;  %1888 = vmatpush.xpose.msk.msra.mxu2 %vm60_vm0, %v3395_v54  ;;  %1653 = vst [vmem:[%s3860_s3 + $0xe8] sm:$0xff] %v714_v60 }
 0x1a3   :  { %1862 = vmatpush.xpose.msk.msra.mxu1 %vm60_vm0, %v3402_v55  ;;  %1906 = vmatpush.xpose.msk.msra.mxu3 %vm60_vm0, %v3402_v55 }
 0x1a6   :  { %1845 = vmatpush.xpose.msk.msra.mxu0 %vm60_vm0, %v3422_v8  ;;  %1889 = vmatpush.xpose.msk.msra.mxu2 %vm60_vm0, %v3422_v8 }
 0x1a7   :  { %1863 = vmatpush.xpose.msk.msra.mxu1 %vm60_vm0, %v3429_v9  ;;  %1907 = vmatpush.xpose.msk.msra.mxu3 %vm60_vm0, %v3429_v9 }
 0x1aa   :  { %1846 = vmatpush.xpose.msk.msra.mxu0 %vm60_vm0, %v3452_v13  ;;  %1890 = vmatpush.xpose.msk.msra.mxu2 %vm60_vm0, %v3452_v13 }
 0x1ab   :  { %1864 = vmatpush.xpose.msk.msra.mxu1 %vm60_vm0, %v3459_v14  ;;  %1908 = vmatpush.xpose.msk.msra.mxu3 %vm60_vm0, %v3459_v14 }
 0x1ae   :  { %1847 = vmatpush.xpose.msk.msra.mxu0 %vm60_vm0, %v3476_v62  ;;  %1891 = vmatpush.xpose.msk.msra.mxu2 %vm60_vm0, %v3476_v62  ;;  %v738_v57 = vpop.permute.xlu2 %737 }
 0x1af   :  { %1865 = vmatpush.xpose.msk.msra.mxu1 %vm60_vm0, %v3483_v63  ;;  %1909 = vmatpush.xpose.msk.msra.mxu3 %vm60_vm0, %v3483_v63 }
 0x1b2   :  { %1848 = vmatpush.xpose.msk.msra.mxu0 %vm60_vm0, %v3503_v32  ;;  %1892 = vmatpush.xpose.msk.msra.mxu2 %vm60_vm0, %v3503_v32 }
 0x1b3   :  { %1866 = vmatpush.xpose.msk.msra.mxu1 %vm60_vm0, %v3510_v20  ;;  %1910 = vmatpush.xpose.msk.msra.mxu3 %vm60_vm0, %v3510_v20 }
 0x1b6   :  { %1849 = vmatpush.xpose.msk.msra.mxu0 %vm60_vm0, %v3524_v26  ;;  %1893 = vmatpush.xpose.msk.msra.mxu2 %vm60_vm0, %v3524_v26 }
 0x1b7   :  { %1867 = vmatpush.xpose.msk.msra.mxu1 %vm60_vm0, %v3531_v27  ;;  %1911 = vmatpush.xpose.msk.msra.mxu3 %vm60_vm0, %v3531_v27 }
 0x1ba   :  { %1850 = vmatpush.xpose.msk.msra.mxu0 %vm60_vm0, %v3542_v28  ;;  %1894 = vmatpush.xpose.msk.msra.mxu2 %vm60_vm0, %v3542_v28 }
 0x1bb   :  { %1868 = vmatpush.xpose.msk.msra.mxu1 %vm60_vm0, %v3549_v34  ;;  %1912 = vmatpush.xpose.msk.msra.mxu3 %vm60_vm0, %v3549_v34 }
 0x1be   :  { %1851 = vmatpush.xpose.msk.msra.mxu0 %vm60_vm0, %v3560_v35  ;;  %1895 = vmatpush.xpose.msk.msra.mxu2 %vm60_vm0, %v3560_v35 }
 0x1bf   :  { %1869 = vmatpush.xpose.msk.msra.mxu1 %vm60_vm0, %v3567_v36  ;;  %1913 = vmatpush.xpose.msk.msra.mxu3 %vm60_vm0, %v3567_v36 }
 0x1c1   :  { %1852 = vmatmul.msk.f32.vlgmr.msra.gmra.mxu0 %vm60_vm0, %v1832_v37  ;;  %1896 = vmatmul.msk.f32.vlgmr.msra.gmra.mxu2 %vm60_vm0, %v1876_v42 }
 0x1c2   :  { %1924 = vmatpush.xpose.msk.msrb.mxu0 %vm60_vm0, %v3200_v22  ;;  %1968 = vmatpush.xpose.msk.msrb.mxu2 %vm60_vm0, %v3200_v22  ;;  %v1833_v22 = vld [vmem:[%s3858_s1 + $0xc8] sm:$0x3] }
 0x1c3   :  { %1942 = vmatpush.xpose.msk.msrb.mxu1 %vm60_vm0, %v3207_v23  ;;  %1986 = vmatpush.xpose.msk.msrb.mxu3 %vm60_vm0, %v3207_v23  ;;  %v1877_v23 = vld [vmem:[%s3858_s1 + $0xd8] sm:$0x3] }
 0x1c4   :  { %1870 = vmatmul.msk.f32.vlgmr.msra.gmra.mxu1 %vm60_vm0, %v1832_v37  ;;  %1914 = vmatmul.msk.f32.vlgmr.msra.gmra.mxu3 %vm60_vm0, %v1876_v42 }
 0x1c6   :  { %1925 = vmatpush.xpose.msk.msrb.mxu0 %vm60_vm0, %v3218_v24  ;;  %1969 = vmatpush.xpose.msk.msrb.mxu2 %vm60_vm0, %v3218_v24  ;;  %v1923_v24 = vld [vmem:[%s3859_s2 + $0xe8] sm:$0x3] }
 0x1c7   :  { %1943 = vmatpush.xpose.msk.msrb.mxu1 %vm60_vm0, %v3225_v25  ;;  %1987 = vmatpush.xpose.msk.msrb.mxu3 %vm60_vm0, %v3225_v25  ;;  %v620_v25 = vpop.f32.mrf.mxu0 }
 0x1c8   :  { %1175 = vperm.xlu2 %2011, %v1923_v24  }
 0x1c9   :  { %1853 = vmatmul.msk.f32.gmra.mxu0 %vm60_vm0, %v1833_v22  ;;  %1897 = vmatmul.msk.f32.gmra.mxu2 %vm60_vm0, %v1877_v23 }
 0x1ca   :  { %1926 = vmatpush.xpose.msk.msrb.mxu0 %vm60_vm0, %v3248_v29  ;;  %1970 = vmatpush.xpose.msk.msrb.mxu2 %vm60_vm0, %v3248_v29  ;;  %v643_v29 = vpop.f32.mrf.mxu1 }
 0x1cb   :  { %1944 = vmatpush.xpose.msk.msrb.mxu1 %vm60_vm0, %v3255_v30  ;;  %1988 = vmatpush.xpose.msk.msrb.mxu3 %vm60_vm0, %v3255_v30  ;;  %v693_v30 = vpop.f32.mrf.mxu2 }
 0x1cc   :  { %1871 = vmatmul.msk.f32.gmra.mxu1 %vm60_vm0, %v1833_v22  ;;  %1915 = vmatmul.msk.f32.gmra.mxu3 %vm60_vm0, %v1877_v23 }
 0x1ce   :  { %1927 = vmatpush.xpose.msk.msrb.mxu0 %vm60_vm0, %v3267_v31  ;;  %1971 = vmatpush.xpose.msk.msrb.mxu2 %vm60_vm0, %v3267_v31  ;;  %v716_v31 = vpop.f32.mrf.mxu3 }
 0x1cf   :  { %1945 = vmatpush.xpose.msk.msrb.mxu1 %vm60_vm0, %v3274_v33  ;;  %1989 = vmatpush.xpose.msk.msrb.mxu3 %vm60_vm0, %v3274_v33  ;;  %v763_v45 = vpop.f32.mrf.mxu0 }
 0x1d2   :  { %1928 = vmatpush.xpose.msk.msrb.mxu0 %vm60_vm0, %v3299_v38  ;;  %1972 = vmatpush.xpose.msk.msrb.mxu2 %vm60_vm0, %v3299_v38 }
 0x1d3   :  { %1946 = vmatpush.xpose.msk.msrb.mxu1 %vm60_vm0, %v3306_v39  ;;  %1990 = vmatpush.xpose.msk.msrb.mxu3 %vm60_vm0, %v3306_v39 }
 0x1d6   :  { %1929 = vmatpush.xpose.msk.msrb.mxu0 %vm60_vm0, %v3319_v40  ;;  %1973 = vmatpush.xpose.msk.msrb.mxu2 %vm60_vm0, %v3319_v40  ;;  %v592_v33 = vpop.permute.xlu1 %591  ;;  %v665_v38 = vpop.permute.xlu0 %664 }
 0x1d7   :  { %1947 = vmatpush.xpose.msk.msrb.mxu1 %vm60_vm0, %v3326_v41  ;;  %1991 = vmatpush.xpose.msk.msrb.mxu3 %vm60_vm0, %v3326_v41  ;;  %v621_v39 = vadd.f32 %v620_v25, %v592_v33  ;;  %v644_v40 = vadd.f32 %v643_v29, %v592_v33  ;;  %v694_v41 = vadd.f32 %v693_v30, %v665_v38 }
 0x1d8   :  { %v717_v44 = vadd.f32 %v716_v31, %v665_v38 }
 0x1d9   :  { %1610 = vst [vmem:[%s3860_s3 + $0xd0] sm:$0x3] %v621_v39 }
 0x1da   :  { %1930 = vmatpush.xpose.msk.msrb.mxu0 %vm60_vm0, %v3351_v46  ;;  %1974 = vmatpush.xpose.msk.msrb.mxu2 %vm60_vm0, %v3351_v46  ;;  %1611 = vst [vmem:[%s3860_s3 + $0xd8] sm:$0x3] %v644_v40  ;;  %v786_v46 = vpop.f32.mrf.mxu1 }
 0x1db   :  { %1948 = vmatpush.xpose.msk.msrb.mxu1 %vm60_vm0, %v3358_v47  ;;  %1992 = vmatpush.xpose.msk.msrb.mxu3 %vm60_vm0, %v3358_v47  ;;  %1654 = vst [vmem:[%s3860_s3 + $0xf0] sm:$0x3] %v694_v41  ;;  %v836_v47 = vpop.f32.mrf.mxu2 }
 0x1dc   :  { %1655 = vst [vmem:[%s3860_s3 + $0xf8] sm:$0x3] %v717_v44 }
 0x1de   :  { %1931 = vmatpush.xpose.msk.msrb.mxu0 %vm60_vm0, %v3371_v48  ;;  %1975 = vmatpush.xpose.msk.msrb.mxu2 %vm60_vm0, %v3371_v48  ;;  %v859_v48 = vpop.f32.mrf.mxu3  ;;  %v806_v50 = vpop.permute.xlu0 %805 }
 0x1df   :  { %1949 = vmatpush.xpose.msk.msrb.mxu1 %vm60_vm0, %v3378_v49  ;;  %1993 = vmatpush.xpose.msk.msrb.mxu3 %vm60_vm0, %v3378_v49  ;;  %v733_v49 = vpop.permute.xlu1 %732  ;;  %v837_v53 = vadd.f32 %v836_v47, %v806_v50 }
 0x1e0   :  { %v764_v51 = vadd.f32 %v763_v45, %v733_v49  ;;  %v787_v52 = vadd.f32 %v786_v46, %v733_v49 }
 0x1e1   :  { %1740 = vst [vmem:[%s3860_s3 + $0x120] sm:$0xff] %v837_v53 }
 0x1e2   :  { %1932 = vmatpush.xpose.msk.msrb.mxu0 %vm60_vm0, %v3395_v54  ;;  %1976 = vmatpush.xpose.msk.msrb.mxu2 %vm60_vm0, %v3395_v54  ;;  %v860_v54 = vadd.f32 %v859_v48, %v806_v50  ;;  %1696 = vst [vmem:[%s3860_s3 + $0x100] sm:$0xff] %v764_v51 }
 0x1e3   :  { %1950 = vmatpush.xpose.msk.msrb.mxu1 %vm60_vm0, %v3402_v55  ;;  %1994 = vmatpush.xpose.msk.msrb.mxu3 %vm60_vm0, %v3402_v55  ;;  %1697 = vst [vmem:[%s3860_s3 + $0x108] sm:$0xff] %v787_v52  ;;  %v1920_v55 = vld [vmem:[%s3858_s1 + $0xe0] sm:$0xff] }
 0x1e4   :  { %1741 = vst [vmem:[%s3860_s3 + $0x128] sm:$0xff] %v860_v54 }
 0x1e6   :  { %1933 = vmatpush.xpose.msk.msrb.mxu0 %vm60_vm0, %v3422_v8  ;;  %1977 = vmatpush.xpose.msk.msrb.mxu2 %vm60_vm0, %v3422_v8  ;;  %v879_v8 = vpop.permute.xlu2 %878  ;;  %v884_v17 = vpop.permute.xlu0 %883 }
 0x1e7   :  { %1951 = vmatpush.xpose.msk.msrb.mxu1 %vm60_vm0, %v3429_v9  ;;  %1995 = vmatpush.xpose.msk.msrb.mxu3 %vm60_vm0, %v3429_v9 }
 0x1ea   :  { %1934 = vmatpush.xpose.msk.msrb.mxu0 %vm60_vm0, %v3452_v13  ;;  %1978 = vmatpush.xpose.msk.msrb.mxu2 %vm60_vm0, %v3452_v13  ;;  %v811_v6 = vpop.permute.xlu1 %810 }
 0x1eb   :  { %1952 = vmatpush.xpose.msk.msrb.mxu1 %vm60_vm0, %v3459_v14  ;;  %1996 = vmatpush.xpose.msk.msrb.mxu3 %vm60_vm0, %v3459_v14 }
 0x1ee   :  { %1935 = vmatpush.xpose.msk.msrb.mxu0 %vm60_vm0, %v3476_v62  ;;  %1979 = vmatpush.xpose.msk.msrb.mxu2 %vm60_vm0, %v3476_v62 }
 0x1ef   :  { %1953 = vmatpush.xpose.msk.msrb.mxu1 %vm60_vm0, %v3483_v63  ;;  %1997 = vmatpush.xpose.msk.msrb.mxu3 %vm60_vm0, %v3483_v63 }
 0x1f2   :  { %1936 = vmatpush.xpose.msk.msrb.mxu0 %vm60_vm0, %v3503_v32  ;;  %1980 = vmatpush.xpose.msk.msrb.mxu2 %vm60_vm0, %v3503_v32  ;;  %v952_v16 = vpop.permute.xlu1 %951  ;;  %v957_v32 = vpop.permute.xlu2 %956 }
 0x1f3   :  { %1954 = vmatpush.xpose.msk.msrb.mxu1 %vm60_vm0, %v3510_v20  ;;  %1998 = vmatpush.xpose.msk.msrb.mxu3 %vm60_vm0, %v3510_v20 }
 0x1f5   :  { %v766_v2 = vpop.f32.mrf.mxu0 }
 0x1f6   :  { %1937 = vmatpush.xpose.msk.msrb.mxu0 %vm60_vm0, %v3524_v26  ;;  %1981 = vmatpush.xpose.msk.msrb.mxu2 %vm60_vm0, %v3524_v26  ;;  %v767_v3 = vadd.f32 %v766_v2, %v738_v57  ;;  %v789_v4 = vpop.f32.mrf.mxu1 }
 0x1f7   :  { %1955 = vmatpush.xpose.msk.msrb.mxu1 %vm60_vm0, %v3531_v27  ;;  %1999 = vmatpush.xpose.msk.msrb.mxu3 %vm60_vm0, %v3531_v27  ;;  %v790_v5 = vadd.f32 %v789_v4, %v738_v57 }
 0x1f8   :  { %1698 = vst [vmem:[%s3860_s3 + $0x110] sm:$0x3] %v767_v3 }
 0x1f9   :  { %1699 = vst [vmem:[%s3860_s3 + $0x118] sm:$0x3] %v790_v5 }
 0x1fa   :  { %1938 = vmatpush.xpose.msk.msrb.mxu0 %vm60_vm0, %v3542_v28  ;;  %1982 = vmatpush.xpose.msk.msrb.mxu2 %vm60_vm0, %v3542_v28  ;;  %v1025_v28 = vpop.permute.xlu0 %1024  ;;  %v1030_v42 = vpop.permute.xlu1 %1029 }
 0x1fb   :  { %1956 = vmatpush.xpose.msk.msrb.mxu1 %vm60_vm0, %v3549_v34  ;;  %2000 = vmatpush.xpose.msk.msrb.mxu3 %vm60_vm0, %v3549_v34  ;;  %v1098_v43 = vpop.permute.xlu2 %1097 }
 0x1fe   :  { %1939 = vmatpush.xpose.msk.msrb.mxu0 %vm60_vm0, %v3560_v35  ;;  %1983 = vmatpush.xpose.msk.msrb.mxu2 %vm60_vm0, %v3560_v35  ;;  %v909_v10 = vpop.f32.mrf.mxu0 }
 0x1ff   :  { %1957 = vmatpush.xpose.msk.msrb.mxu1 %vm60_vm0, %v3567_v36  ;;  %2001 = vmatpush.xpose.msk.msrb.mxu3 %vm60_vm0, %v3567_v36  ;;  %v839_v7 = vpop.f32.mrf.mxu2  ;;  %v862_v12 = vpop.f32.mrf.mxu3  ;;  %v910_v13 = vadd.f32 %v909_v10, %v879_v8 }
 0x200   :  { %v840_v9 = vadd.f32 %v839_v7, %v811_v6  ;;  %v863_v15 = vadd.f32 %v862_v12, %v811_v6 }
 0x201   :  { %1940 = vmatmul.msk.f32.vlgmr.msrb.gmra.mxu0 %vm60_vm0, %v1920_v55  ;;  %1984 = vmatmul.msk.f32.vlgmr.msrb.gmra.mxu2 %vm60_vm0, %v1964_v56  ;;  %v932_v11 = vpop.f32.mrf.mxu1  ;;  %1784 = vst [vmem:[%s3860_s3 + $0x140] sm:$0xff] %v910_v13 }
 0x202   :  { %1958 = vmatmul.msk.f32.vlgmr.msrb.gmra.mxu1 %vm60_vm0, %v1920_v55  ;;  %2002 = vmatmul.msk.f32.vlgmr.msrb.gmra.mxu3 %vm60_vm0, %v1964_v56  ;;  %1742 = vst [vmem:[%s3860_s3 + $0x130] sm:$0x3] %v840_v9  ;;  %v933_v14 = vadd.f32 %v932_v11, %v879_v8  ;;  %v1103_v38 = vpop.permute.xlu0 %1102  ;;  %v1171_v45 = vpop.permute.xlu1 %1170 }
 0x203   :  { %1743 = vst [vmem:[%s3860_s3 + $0x138] sm:$0x3] %v863_v15 }
 0x204   :  { %1785 = vst [vmem:[%s3860_s3 + $0x148] sm:$0xff] %v933_v14 }
 0x206   :  { %v912_v58 = vpop.f32.mrf.mxu0 }
 0x207   :  { %v982_v19 = vpop.f32.mrf.mxu2  ;;  %v913_v60 = vadd.f32 %v912_v58, %v884_v17 }
 0x208   :  { %v1005_v59 = vpop.f32.mrf.mxu3  ;;  %v983_v61 = vadd.f32 %v982_v19, %v952_v16 }
 0x209   :  { %1941 = vmatmul.msk.f32.gmra.mxu0 %vm60_vm0, %v1921_v0  ;;  %1985 = vmatmul.msk.f32.gmra.mxu2 %vm60_vm0, %v1965_v1  ;;  %v935_v18 = vpop.f32.mrf.mxu1  ;;  %v1006_v62 = vadd.f32 %v1005_v59, %v952_v16  ;;  %1786 = vst [vmem:[%s3860_s3 + $0x150] sm:$0x3] %v913_v60 }
 0x20a   :  { %1959 = vmatmul.msk.f32.gmra.mxu1 %vm60_vm0, %v1921_v0  ;;  %2003 = vmatmul.msk.f32.gmra.mxu3 %vm60_vm0, %v1965_v1  ;;  %v936_v63 = vadd.f32 %v935_v18, %v884_v17  ;;  %1828 = vst [vmem:[%s3860_s3 + $0x160] sm:$0xff] %v983_v61  ;;  %v1244_v50 = vpop.permute.xlu0 %1243  ;;  %v1249_v2 = vpop.permute.xlu1 %1248 }
 0x20b   :  { %1829 = vst [vmem:[%s3860_s3 + $0x168] sm:$0xff] %v1006_v62 }
 0x20c   :  { %1787 = vst [vmem:[%s3860_s3 + $0x158] sm:$0x3] %v936_v63 }
 0x20f   :  { %v985_v20 = vpop.f32.mrf.mxu2 }
 0x210   :  { %v1008_v21 = vpop.f32.mrf.mxu3  ;;  %v986_v26 = vadd.f32 %v985_v20, %v957_v32 }
 0x211   :  { %v1009_v27 = vadd.f32 %v1008_v21, %v957_v32 }
 0x212   :  { %1830 = vst [vmem:[%s3860_s3 + $0x170] sm:$0x3] %v986_v26 }
 0x213   :  { %1831 = vst [vmem:[%s3860_s3 + $0x178] sm:$0x3] %v1009_v27 }
 0x222   :  { %v1176_v51 = vpop.permute.xlu2 %1175 }
 0x23e   :  { %v1055_v34 = vpop.f32.mrf.mxu0 }
 0x23f   :  { %v1056_v36 = vadd.f32 %v1055_v34, %v1025_v28 }
 0x241   :  { %v1078_v35 = vpop.f32.mrf.mxu1  ;;  %1872 = vst [vmem:[%s3860_s3 + $0x180] sm:$0xff] %v1056_v36 }
 0x242   :  { %v1079_v37 = vadd.f32 %v1078_v35, %v1025_v28 }
 0x244   :  { %1873 = vst [vmem:[%s3860_s3 + $0x188] sm:$0xff] %v1079_v37  ;;  %v1128_v22 = vpop.f32.mrf.mxu2 }
 0x245   :  { %v1129_v24 = vadd.f32 %v1128_v22, %v1098_v43 }
 0x246   :  { %v1058_v29 = vpop.f32.mrf.mxu0 }
 0x247   :  { %v1151_v23 = vpop.f32.mrf.mxu3  ;;  %v1059_v31 = vadd.f32 %v1058_v29, %v1030_v42  ;;  %1916 = vst [vmem:[%s3860_s3 + $0x1a0] sm:$0xff] %v1129_v24 }
 0x248   :  { %v1152_v25 = vadd.f32 %v1151_v23, %v1098_v43 }
 0x249   :  { %v1081_v30 = vpop.f32.mrf.mxu1  ;;  %1874 = vst [vmem:[%s3860_s3 + $0x190] sm:$0x3] %v1059_v31 }
 0x24a   :  { %v1082_v33 = vadd.f32 %v1081_v30, %v1030_v42  ;;  %1917 = vst [vmem:[%s3860_s3 + $0x1a8] sm:$0xff] %v1152_v25 }
 0x24c   :  { %1875 = vst [vmem:[%s3860_s3 + $0x198] sm:$0x3] %v1082_v33  ;;  %v1131_v39 = vpop.f32.mrf.mxu2 }
 0x24d   :  { %v1132_v41 = vadd.f32 %v1131_v39, %v1103_v38 }
 0x24f   :  { %v1154_v40 = vpop.f32.mrf.mxu3  ;;  %1918 = vst [vmem:[%s3860_s3 + $0x1b0] sm:$0x3] %v1132_v41 }
 0x250   :  { %v1155_v44 = vadd.f32 %v1154_v40, %v1103_v38 }
 0x252   :  { %1919 = vst [vmem:[%s3860_s3 + $0x1b8] sm:$0x3] %v1155_v44 }
 0x27e   :  { %v1201_v46 = vpop.f32.mrf.mxu0 }
 0x27f   :  { %v1224_v47 = vpop.f32.mrf.mxu1  ;;  %v1202_v48 = vadd.f32 %v1201_v46, %v1171_v45 }
 0x280   :  { %v1225_v49 = vadd.f32 %v1224_v47, %v1171_v45 }
 0x281   :  { %1960 = vst [vmem:[%s3860_s3 + $0x1c0] sm:$0xff] %v1202_v48 }
 0x282   :  { %1961 = vst [vmem:[%s3860_s3 + $0x1c8] sm:$0xff] %v1225_v49 }
 0x284   :  { %v1274_v52 = vpop.f32.mrf.mxu2 }
 0x285   :  { %v1297_v53 = vpop.f32.mrf.mxu3  ;;  %v1275_v54 = vadd.f32 %v1274_v52, %v1244_v50 }
 0x286   :  { %v1298_v55 = vadd.f32 %v1297_v53, %v1244_v50  ;;  %v1204_v56 = vpop.f32.mrf.mxu0 }
 0x287   :  { %v1227_v57 = vpop.f32.mrf.mxu1  ;;  %v1205_v0 = vadd.f32 %v1204_v56, %v1176_v51  ;;  %2004 = vst [vmem:[%s3860_s3 + $0x1e0] sm:$0xff] %v1275_v54 }
 0x288   :  { %v1228_v1 = vadd.f32 %v1227_v57, %v1176_v51  ;;  %2005 = vst [vmem:[%s3860_s3 + $0x1e8] sm:$0xff] %v1298_v55 }
 0x289   :  { %1962 = vst [vmem:[%s3860_s3 + $0x1d0] sm:$0x3] %v1205_v0 }
 0x28a   :  { %1963 = vst [vmem:[%s3860_s3 + $0x1d8] sm:$0x3] %v1228_v1 }
 0x28c   :  { %v1277_v3 = vpop.f32.mrf.mxu2 }
 0x28d   :  { %v1300_v4 = vpop.f32.mrf.mxu3  ;;  %v1278_v5 = vadd.f32 %v1277_v3, %v1249_v2 }
 0x28e   :  { %v1301_v6 = vadd.f32 %v1300_v4, %v1249_v2 }
 0x28f   :  { %2006 = vst [vmem:[%s3860_s3 + $0x1f0] sm:$0x3] %v1278_v5 }
 0x290   :  { %2007 = vst [vmem:[%s3860_s3 + $0x1f8] sm:$0x3] %v1301_v6 }

</bundles_post_ra>
